<compile_context>
chip_gen: v6e
topology: v6e:2x2x1
jax: 0.10.0
libtpu: 0.0.40
codegen_flags: <defaults>
</compile_context>

<pallas_src>
import functools

import jax
import jax.numpy as jnp
from jax.experimental import pallas as pl
from jax.experimental.pallas import tpu as pltpu

# ----------------------------- config -------------------------------------
B, S = 2, 8
HIDDEN = 32
INTERMEDIATE = 32          # must equal HIDDEN (see TODO above)
NUM_HEADS = 4
HEAD_DIM = HIDDEN // NUM_HEADS
LN_EPS = 1e-6              # encoder layernorms
KAN_LN_EPS = 1e-5          # nn.LayerNorm default inside FasterKANLayer
NUM_GRIDS = 8
GRID = tuple(float(g) for g in jnp.linspace(-2.0, 2.0, NUM_GRIDS))
INV_DEN = 0.5


# ----------------------------- fused kernel --------------------------------
def fused_encoder_layer_kernel(
    x_ref, ln1_g_ref, ln1_b_ref, wqkv_ref, bqkv_ref, wo_ref, bo_ref,
    ln2_g_ref, ln2_b_ref,
    kan1_lng_ref, kan1_lnb_ref, kan1_w_ref,
    kan2_lng_ref, kan2_lnb_ref, kan2_w_ref,
    wfc2_ref, bfc2_ref, o_ref,
    *, num_heads, head_dim, ln_eps, kan_ln_eps, grid_vals, inv_den, scale):
    """One grid step == one batch element; all intermediates stay on-chip."""
    x = x_ref[0]                                      # [S, H]
    hid = x.shape[-1]

    def layernorm(z, g_ref, b_ref, eps):
        m = jnp.mean(z, axis=-1, keepdims=True)
        v = jnp.mean((z - m) ** 2, axis=-1, keepdims=True)
        return (z - m) * jax.lax.rsqrt(v + eps) * g_ref[...] + b_ref[...]

    def rswaf_spline(z, w_ref):
        # RSWAF basis for every grid point, concatenated on the lane axis so
        # the SplineLinear becomes ONE K = G*D MXU contraction.
        parts = []
        for gv in grid_vals:                          # static, len == NUM_GRIDS
            t = jnp.tanh((z - gv) * inv_den)          # EUP
            parts.append(1.0 - t * t)
        basis = jnp.concatenate(parts, axis=-1)       # [S, G*D]
        return jnp.dot(basis, w_ref[...], preferred_element_type=jnp.float32)

    # ---- layer_norm1 + fused QKV projection (single [H, 3H] matmul) ----
    h = layernorm(x, ln1_g_ref, ln1_b_ref, ln_eps)
    qkv = (jnp.dot(h, wqkv_ref[...], preferred_element_type=jnp.float32)
           + bqkv_ref[...])                           # [S, 3H]

    # ---- multi-head self-attention; out_proj folded into the head loop ----
    wo = wo_ref[...]                                  # [H, H]
    attn = jnp.zeros((x.shape[0], hid), jnp.float32)
    for hh in range(num_heads):                       # static, num_heads == 4
        lo = hh * head_dim
        q = qkv[:, lo:lo + head_dim]                  # [S, d]
        k = qkv[:, hid + lo:hid + lo + head_dim]
        v = qkv[:, 2 * hid + lo:2 * hid + lo + head_dim]
        s = jax.lax.dot_general(q, k, (((1,), (1,)), ((), ())),
                                preferred_element_type=jnp.float32) * scale
        m = jnp.max(s, axis=-1, keepdims=True)
        p = jnp.exp(s - m)
        p = p * pl.reciprocal(jnp.sum(p, axis=-1, keepdims=True), approx=True)
        o_h = jnp.dot(p, v, preferred_element_type=jnp.float32)      # [S, d]
        # concat_h(o_h) @ Wo == sum_h o_h @ Wo[h*d:(h+1)*d, :]
        attn = attn + jnp.dot(o_h, wo[lo:lo + head_dim, :],
                              preferred_element_type=jnp.float32)
    attn_out = attn + bo_ref[...] + x                 # out_proj bias + residual

    # ---- layer_norm2 + KAN MLP (FasterKAN: [LN -> RSWAF -> SplineLinear] x2, fc2) ----
    h2 = layernorm(attn_out, ln2_g_ref, ln2_b_ref, ln_eps)
    a1 = layernorm(h2, kan1_lng_ref, kan1_lnb_ref, kan_ln_eps)
    s1 = rswaf_spline(a1, kan1_w_ref)                 # [S, I]
    a2 = layernorm(s1, kan2_lng_ref, kan2_lnb_ref, kan_ln_eps)
    s2 = rswaf_spline(a2, kan2_w_ref)                 # [S, H]
    out = (jnp.dot(s2, wfc2_ref[...], preferred_element_type=jnp.float32)
           + bfc2_ref[...] + attn_out)                # fc2 + residual
    o_ref[0] = out


# ----------------------------- wrapper -------------------------------------
def encoder_layer_forward(x, p):
    Bsz, seq, H = x.shape
    I, G = INTERMEDIATE, NUM_GRIDS

    # Host-side (one-time) weight packing: fused QKV + flattened spline weights.
    wqkv = jnp.concatenate([p["Wq"], p["Wk"], p["Wv"]], axis=1)   # [H, 3H]
    bqkv = jnp.concatenate([p["bq"], p["bk"], p["bv"]], axis=1)   # [1, 3H]
    kan1_w = p["kan1_W"].reshape(G * H, I)                        # g-major rows
    kan2_w = p["kan2_W"].reshape(G * I, H)

    tok_spec = pl.BlockSpec((1, seq, H), lambda b: (b, 0, 0))

    def rep(shape):
        # Weight/bias blocks: full array, same block every grid step
        # (Pallas keeps them resident in VMEM, no re-fetch per step).
        nd = len(shape)
        return pl.BlockSpec(shape, lambda b: (0,) * nd)

    kernel = functools.partial(
        fused_encoder_layer_kernel,
        num_heads=NUM_HEADS, head_dim=HEAD_DIM,
        ln_eps=LN_EPS, kan_ln_eps=KAN_LN_EPS,
        grid_vals=GRID, inv_den=INV_DEN, scale=HEAD_DIM ** -0.5)

    n_tok = Bsz * seq
    cost = pl.CostEstimate(
        flops=2 * n_tok * (3 * H * H + 2 * seq * H + H * H
                           + 2 * G * H * I + I * H),
        transcendentals=n_tok * (2 * G * H + NUM_HEADS * seq),
        bytes_accessed=4 * (2 * n_tok * H + 3 * H * H + H * H
                            + G * H * I + G * I * H + I * H))

    return pl.pallas_call(
        kernel,
        out_shape=jax.ShapeDtypeStruct((Bsz, seq, H), jnp.float32),
        grid=(Bsz,),
        in_specs=[
            tok_spec,
            rep((1, H)), rep((1, H)),                       # layer_norm1
            rep((H, 3 * H)), rep((1, 3 * H)),               # fused QKV
            rep((H, H)), rep((1, H)),                       # out_proj
            rep((1, H)), rep((1, H)),                       # layer_norm2
            rep((1, H)), rep((1, H)), rep((G * H, I)),      # FasterKAN layer 1
            rep((1, I)), rep((1, I)), rep((G * I, H)),      # FasterKAN layer 2
            rep((I, H)), rep((1, H)),                       # fc2
        ],
        out_specs=tok_spec,
        compiler_params=pltpu.CompilerParams(
            dimension_semantics=("parallel",)),  # both TCs on v7x; no-op v5e/v6e
        cost_estimate=cost,
    )(x, p["ln1_g"], p["ln1_b"], wqkv, bqkv, p["Wo"], p["bo"],
      p["ln2_g"], p["ln2_b"],
      p["kan1_ln_g"], p["kan1_ln_b"], kan1_w,
      p["kan2_ln_g"], p["kan2_ln_b"], kan2_w,
      p["Wfc2"], p["bfc2"])


# ----------------------------- reference (pure JAX) -------------------------
def reference_forward(x, p):
    Bsz, seq, H = x.shape
    nH, d = NUM_HEADS, HEAD_DIM

    def ln(z, g, b, eps):
        m = z.mean(-1, keepdims=True)
        v = ((z - m) ** 2).mean(-1, keepdims=True)
        return (z - m) / jnp.sqrt(v + eps) * g + b

    def spline(z, Wg):
        acc = jnp.zeros((z.shape[0], Wg.shape[2]), jnp.float32)
        for gi, gv in enumerate(GRID):
            t = jnp.tanh((z - gv) * INV_DEN)
            acc = acc + (1.0 - t * t) @ Wg[gi]
        return acc

    x2 = x.reshape(Bsz * seq, H)
    h = ln(x2, p["ln1_g"], p["ln1_b"], LN_EPS)
    q = h @ p["Wq"] + p["bq"]
    k = h @ p["Wk"] + p["bk"]
    v = h @ p["Wv"] + p["bv"]

    def split(z):
        return z.reshape(Bsz, seq, nH, d).transpose(0, 2, 1, 3)

    qh, kh, vh = split(q), split(k), split(v)
    s = jnp.einsum("bhqd,bhkd->bhqk", qh, kh) * (d ** -0.5)
    pm = jax.nn.softmax(s, axis=-1)
    o = jnp.einsum("bhqk,bhkd->bhqd", pm, vh).transpose(0, 2, 1, 3).reshape(
        Bsz * seq, H
    )
    attn_out = o @ p["Wo"] + p["bo"] + x2
    h2 = ln(attn_out, p["ln2_g"], p["ln2_b"], LN_EPS)
    a1 = ln(h2, p["kan1_ln_g"], p["kan1_ln_b"], KAN_LN_EPS)
    k1 = spline(a1, p["kan1_W"])
    a2 = ln(k1, p["kan2_ln_g"], p["kan2_ln_b"], KAN_LN_EPS)
    k2 = spline(a2, p["kan2_W"])
    out = k2 @ p["Wfc2"] + p["bfc2"] + attn_out
    return out.reshape(Bsz, seq, H)


# ----------------------------- params -------------------------------------
def init_params(key):
    ks = jax.random.split(key, 16)

    def w(k, shape, scale=0.05):
        return (scale * jax.random.normal(k, shape)).astype(jnp.float32)

    H, I, G = HIDDEN, INTERMEDIATE, NUM_GRIDS
    return {
        "ln1_g": jnp.ones((1, H), jnp.float32),
        "ln1_b": jnp.zeros((1, H), jnp.float32),
        "Wq": w(ks[0], (H, H)), "bq": w(ks[1], (1, H), 0.01),
        "Wk": w(ks[2], (H, H)), "bk": w(ks[3], (1, H), 0.01),
        "Wv": w(ks[4], (H, H)), "bv": w(ks[5], (1, H), 0.01),
        "Wo": w(ks[6], (H, H)), "bo": w(ks[7], (1, H), 0.01),
        "ln2_g": jnp.ones((1, H), jnp.float32),
        "ln2_b": jnp.zeros((1, H), jnp.float32),
        "kan1_ln_g": jnp.ones((1, H), jnp.float32),
        "kan1_ln_b": jnp.zeros((1, H), jnp.float32),
        "kan1_W": w(ks[8], (G, H, I), 0.1),   # SplineLinear weight [g, d_in, d_out]
        "kan2_ln_g": jnp.ones((1, I), jnp.float32),
        "kan2_ln_b": jnp.zeros((1, I), jnp.float32),
        "kan2_W": w(ks[9], (G, I, H), 0.1),
        "Wfc2": w(ks[10], (I, H)), "bfc2": w(ks[11], (1, H), 0.01),
    }


# ----------------------------- main -------------------------------------
if __name__ == "__main__":
    key = jax.random.PRNGKey(0)
    kx, kp = jax.random.split(key)
    x = jax.random.normal(kx, (B, S, HIDDEN), jnp.float32)
    params = init_params(kp)

    fwd = jax.jit(encoder_layer_forward)
    out = jax.block_until_ready(fwd(x, params))

    ref = reference_forward(x, params)
    assert out.shape == (B, S, HIDDEN)
    # Slightly looser tolerance than the exact-softmax version because the
    # softmax denominator uses the EUP approximate reciprocal.
    max_err = float(jnp.max(jnp.abs(out - ref)))
    assert jnp.allclose(out, ref, atol=2e-3, rtol=2e-3), max_err
    print("KERNEL_OK")
</pallas_src>

<mosaic_0001>
module attributes {stable_mosaic.version = 11 : i64} {
  func.func @fused_encoder_layer_kernel(%arg0: i32, %arg1: memref<1x8x32xf32, #tpu.memory_space<vmem>>, %arg2: memref<1x32xf32, #tpu.memory_space<vmem>>, %arg3: memref<1x32xf32, #tpu.memory_space<vmem>>, %arg4: memref<32x96xf32, #tpu.memory_space<vmem>>, %arg5: memref<1x96xf32, #tpu.memory_space<vmem>>, %arg6: memref<32x32xf32, #tpu.memory_space<vmem>>, %arg7: memref<1x32xf32, #tpu.memory_space<vmem>>, %arg8: memref<1x32xf32, #tpu.memory_space<vmem>>, %arg9: memref<1x32xf32, #tpu.memory_space<vmem>>, %arg10: memref<1x32xf32, #tpu.memory_space<vmem>>, %arg11: memref<1x32xf32, #tpu.memory_space<vmem>>, %arg12: memref<256x32xf32, #tpu.memory_space<vmem>>, %arg13: memref<1x32xf32, #tpu.memory_space<vmem>>, %arg14: memref<1x32xf32, #tpu.memory_space<vmem>>, %arg15: memref<256x32xf32, #tpu.memory_space<vmem>>, %arg16: memref<32x32xf32, #tpu.memory_space<vmem>>, %arg17: memref<1x32xf32, #tpu.memory_space<vmem>>, %arg18: memref<1x8x32xf32, #tpu.memory_space<vmem>>) attributes {dimension_semantics = [#tpu.dimension_semantics<parallel>], iteration_bounds = array<i64: 2>, scalar_prefetch = 0 : i64, scratch_operands = 0 : i64, tpu.core_type = #tpu.core_type<tc>, window_params = [{transform_indices = @transform_0, window_bounds = array<i64: 1, 8, 32>}, {pipeline_mode = #tpu.pipeline_mode<synchronous>, transform_indices = @transform_1, window_bounds = array<i64: 1, 32>}, {pipeline_mode = #tpu.pipeline_mode<synchronous>, transform_indices = @transform_2, window_bounds = array<i64: 1, 32>}, {pipeline_mode = #tpu.pipeline_mode<synchronous>, transform_indices = @transform_3, window_bounds = array<i64: 32, 96>}, {pipeline_mode = #tpu.pipeline_mode<synchronous>, transform_indices = @transform_4, window_bounds = array<i64: 1, 96>}, {pipeline_mode = #tpu.pipeline_mode<synchronous>, transform_indices = @transform_5, window_bounds = array<i64: 32, 32>}, {pipeline_mode = #tpu.pipeline_mode<synchronous>, transform_indices = @transform_6, window_bounds = array<i64: 1, 32>}, {pipeline_mode = #tpu.pipeline_mode<synchronous>, transform_indices = @transform_7, window_bounds = array<i64: 1, 32>}, {pipeline_mode = #tpu.pipeline_mode<synchronous>, transform_indices = @transform_8, window_bounds = array<i64: 1, 32>}, {pipeline_mode = #tpu.pipeline_mode<synchronous>, transform_indices = @transform_9, window_bounds = array<i64: 1, 32>}, {pipeline_mode = #tpu.pipeline_mode<synchronous>, transform_indices = @transform_10, window_bounds = array<i64: 1, 32>}, {pipeline_mode = #tpu.pipeline_mode<synchronous>, transform_indices = @transform_11, window_bounds = array<i64: 256, 32>}, {pipeline_mode = #tpu.pipeline_mode<synchronous>, transform_indices = @transform_12, window_bounds = array<i64: 1, 32>}, {pipeline_mode = #tpu.pipeline_mode<synchronous>, transform_indices = @transform_13, window_bounds = array<i64: 1, 32>}, {pipeline_mode = #tpu.pipeline_mode<synchronous>, transform_indices = @transform_14, window_bounds = array<i64: 256, 32>}, {pipeline_mode = #tpu.pipeline_mode<synchronous>, transform_indices = @transform_15, window_bounds = array<i64: 32, 32>}, {pipeline_mode = #tpu.pipeline_mode<synchronous>, transform_indices = @transform_16, window_bounds = array<i64: 1, 32>}, {transform_indices = @transform_17, window_bounds = array<i64: 1, 8, 32>}]} {
    %c0 = arith.constant 0 : index
    %c0_0 = arith.constant 0 : index
    %c0_1 = arith.constant 0 : index
    %0 = vector.load %arg1[%c0, %c0_0, %c0_1] : memref<1x8x32xf32, #tpu.memory_space<vmem>>, vector<1x8x32xf32>
    %1 = vector.shape_cast %0 : vector<1x8x32xf32> to vector<8x32xf32>
    %cst = arith.constant dense<0.000000e+00> : vector<8xf32>
    %2 = vector.multi_reduction <add>, %1, %cst [1] : vector<8x32xf32> to vector<8xf32>
    %3 = vector.shape_cast %2 : vector<8xf32> to vector<8x1xf32>
    %cst_2 = arith.constant 3.200000e+01 : f32
    %4 = vector.broadcast %cst_2 : f32 to vector<8x1xf32>
    %5 = arith.divf %3, %4 : vector<8x1xf32>
    %6 = vector.broadcast %5 : vector<8x1xf32> to vector<8x32xf32>
    %7 = arith.subf %1, %6 : vector<8x32xf32>
    %8 = arith.mulf %7, %7 : vector<8x32xf32>
    %cst_3 = arith.constant dense<0.000000e+00> : vector<8xf32>
    %9 = vector.multi_reduction <add>, %8, %cst_3 [1] : vector<8x32xf32> to vector<8xf32>
    %10 = vector.shape_cast %9 : vector<8xf32> to vector<8x1xf32>
    %cst_4 = arith.constant 3.200000e+01 : f32
    %11 = vector.broadcast %cst_4 : f32 to vector<8x1xf32>
    %12 = arith.divf %10, %11 : vector<8x1xf32>
    %13 = vector.broadcast %5 : vector<8x1xf32> to vector<8x32xf32>
    %14 = arith.subf %1, %13 : vector<8x32xf32>
    %cst_5 = arith.constant 9.99999997E-7 : f32
    %15 = vector.broadcast %cst_5 : f32 to vector<8x1xf32>
    %16 = arith.addf %12, %15 : vector<8x1xf32>
    %17 = math.rsqrt %16 : vector<8x1xf32>
    %18 = vector.broadcast %17 : vector<8x1xf32> to vector<8x32xf32>
    %19 = arith.mulf %14, %18 : vector<8x32xf32>
    %c0_6 = arith.constant 0 : index
    %c0_7 = arith.constant 0 : index
    %20 = vector.load %arg2[%c0_6, %c0_7] : memref<1x32xf32, #tpu.memory_space<vmem>>, vector<1x32xf32>
    %21 = vector.broadcast %20 : vector<1x32xf32> to vector<8x32xf32>
    %22 = arith.mulf %19, %21 : vector<8x32xf32>
    %c0_8 = arith.constant 0 : index
    %c0_9 = arith.constant 0 : index
    %23 = vector.load %arg3[%c0_8, %c0_9] : memref<1x32xf32, #tpu.memory_space<vmem>>, vector<1x32xf32>
    %24 = vector.broadcast %23 : vector<1x32xf32> to vector<8x32xf32>
    %25 = arith.addf %22, %24 : vector<8x32xf32>
    %c0_10 = arith.constant 0 : index
    %c0_11 = arith.constant 0 : index
    %26 = vector.load %arg4[%c0_10, %c0_11] : memref<32x96xf32, #tpu.memory_space<vmem>>, vector<32x96xf32>
    %cst_12 = arith.constant dense<0.000000e+00> : vector<8x96xf32>
    %27 = tpu.matmul %25, %26, %cst_12 {dimension_numbers = #tpu.dot_dimension_numbers<[1], [0], [0], [1], [0, 0, 1, 1], [], []>} : vector<8x32xf32>, vector<32x96xf32>, vector<8x96xf32> -> vector<8x96xf32>
    %c0_13 = arith.constant 0 : index
    %c0_14 = arith.constant 0 : index
    %28 = vector.load %arg5[%c0_13, %c0_14] : memref<1x96xf32, #tpu.memory_space<vmem>>, vector<1x96xf32>
    %29 = vector.broadcast %28 : vector<1x96xf32> to vector<8x96xf32>
    %30 = arith.addf %27, %29 : vector<8x96xf32>
    %c0_15 = arith.constant 0 : index
    %c0_16 = arith.constant 0 : index
    %31 = vector.load %arg6[%c0_15, %c0_16] : memref<32x32xf32, #tpu.memory_space<vmem>>, vector<32x32xf32>
    %cst_17 = arith.constant 0.000000e+00 : f32
    %32 = vector.broadcast %cst_17 : f32 to vector<8x32xf32>
    %33 = vector.extract_strided_slice %30 {offsets = [0, 0], sizes = [8, 8], strides = [1, 1]} : vector<8x96xf32> to vector<8x8xf32>
    %34 = vector.extract_strided_slice %30 {offsets = [0, 32], sizes = [8, 8], strides = [1, 1]} : vector<8x96xf32> to vector<8x8xf32>
    %35 = vector.extract_strided_slice %30 {offsets = [0, 64], sizes = [8, 8], strides = [1, 1]} : vector<8x96xf32> to vector<8x8xf32>
    %cst_18 = arith.constant dense<0.000000e+00> : vector<8x8xf32>
    %36 = tpu.matmul %33, %34, %cst_18 {dimension_numbers = #tpu.dot_dimension_numbers<[1], [1], [0], [0], [0, 0, 1, 0], [], []>} : vector<8x8xf32>, vector<8x8xf32>, vector<8x8xf32> -> vector<8x8xf32>
    %cst_19 = arith.constant 0.353553385 : f32
    %37 = vector.broadcast %cst_19 : f32 to vector<8x8xf32>
    %38 = arith.mulf %36, %37 : vector<8x8xf32>
    %cst_20 = arith.constant dense<0xFF800000> : vector<8xf32>
    %39 = vector.multi_reduction <maximumf>, %38, %cst_20 [1] : vector<8x8xf32> to vector<8xf32>
    %40 = vector.shape_cast %39 : vector<8xf32> to vector<8x1xf32>
    %41 = vector.broadcast %40 : vector<8x1xf32> to vector<8x8xf32>
    %42 = arith.subf %38, %41 : vector<8x8xf32>
    %43 = math.exp %42 : vector<8x8xf32>
    %cst_21 = arith.constant dense<0.000000e+00> : vector<8xf32>
    %44 = vector.multi_reduction <add>, %43, %cst_21 [1] : vector<8x8xf32> to vector<8xf32>
    %45 = vector.shape_cast %44 : vector<8xf32> to vector<8x1xf32>
    %46 = tpu.reciprocal %45 {approx = true} : vector<8x1xf32> -> vector<8x1xf32>
    %47 = vector.broadcast %46 : vector<8x1xf32> to vector<8x8xf32>
    %48 = arith.mulf %43, %47 : vector<8x8xf32>
    %cst_22 = arith.constant dense<0.000000e+00> : vector<8x8xf32>
    %49 = tpu.matmul %48, %35, %cst_22 {dimension_numbers = #tpu.dot_dimension_numbers<[1], [0], [0], [1], [0, 0, 1, 1], [], []>} : vector<8x8xf32>, vector<8x8xf32>, vector<8x8xf32> -> vector<8x8xf32>
    %50 = vector.extract_strided_slice %31 {offsets = [0, 0], sizes = [8, 32], strides = [1, 1]} : vector<32x32xf32> to vector<8x32xf32>
    %cst_23 = arith.constant dense<0.000000e+00> : vector<8x32xf32>
    %51 = tpu.matmul %49, %50, %cst_23 {dimension_numbers = #tpu.dot_dimension_numbers<[1], [0], [0], [1], [0, 0, 1, 1], [], []>} : vector<8x8xf32>, vector<8x32xf32>, vector<8x32xf32> -> vector<8x32xf32>
    %52 = arith.addf %32, %51 : vector<8x32xf32>
    %53 = vector.extract_strided_slice %30 {offsets = [0, 8], sizes = [8, 8], strides = [1, 1]} : vector<8x96xf32> to vector<8x8xf32>
    %54 = vector.extract_strided_slice %30 {offsets = [0, 40], sizes = [8, 8], strides = [1, 1]} : vector<8x96xf32> to vector<8x8xf32>
    %55 = vector.extract_strided_slice %30 {offsets = [0, 72], sizes = [8, 8], strides = [1, 1]} : vector<8x96xf32> to vector<8x8xf32>
    %cst_24 = arith.constant dense<0.000000e+00> : vector<8x8xf32>
    %56 = tpu.matmul %53, %54, %cst_24 {dimension_numbers = #tpu.dot_dimension_numbers<[1], [1], [0], [0], [0, 0, 1, 0], [], []>} : vector<8x8xf32>, vector<8x8xf32>, vector<8x8xf32> -> vector<8x8xf32>
    %cst_25 = arith.constant 0.353553385 : f32
    %57 = vector.broadcast %cst_25 : f32 to vector<8x8xf32>
    %58 = arith.mulf %56, %57 : vector<8x8xf32>
    %cst_26 = arith.constant dense<0xFF800000> : vector<8xf32>
    %59 = vector.multi_reduction <maximumf>, %58, %cst_26 [1] : vector<8x8xf32> to vector<8xf32>
    %60 = vector.shape_cast %59 : vector<8xf32> to vector<8x1xf32>
    %61 = vector.broadcast %60 : vector<8x1xf32> to vector<8x8xf32>
    %62 = arith.subf %58, %61 : vector<8x8xf32>
    %63 = math.exp %62 : vector<8x8xf32>
    %cst_27 = arith.constant dense<0.000000e+00> : vector<8xf32>
    %64 = vector.multi_reduction <add>, %63, %cst_27 [1] : vector<8x8xf32> to vector<8xf32>
    %65 = vector.shape_cast %64 : vector<8xf32> to vector<8x1xf32>
    %66 = tpu.reciprocal %65 {approx = true} : vector<8x1xf32> -> vector<8x1xf32>
    %67 = vector.broadcast %66 : vector<8x1xf32> to vector<8x8xf32>
    %68 = arith.mulf %63, %67 : vector<8x8xf32>
    %cst_28 = arith.constant dense<0.000000e+00> : vector<8x8xf32>
    %69 = tpu.matmul %68, %55, %cst_28 {dimension_numbers = #tpu.dot_dimension_numbers<[1], [0], [0], [1], [0, 0, 1, 1], [], []>} : vector<8x8xf32>, vector<8x8xf32>, vector<8x8xf32> -> vector<8x8xf32>
    %70 = vector.extract_strided_slice %31 {offsets = [8, 0], sizes = [8, 32], strides = [1, 1]} : vector<32x32xf32> to vector<8x32xf32>
    %cst_29 = arith.constant dense<0.000000e+00> : vector<8x32xf32>
    %71 = tpu.matmul %69, %70, %cst_29 {dimension_numbers = #tpu.dot_dimension_numbers<[1], [0], [0], [1], [0, 0, 1, 1], [], []>} : vector<8x8xf32>, vector<8x32xf32>, vector<8x32xf32> -> vector<8x32xf32>
    %72 = arith.addf %52, %71 : vector<8x32xf32>
    %73 = vector.extract_strided_slice %30 {offsets = [0, 16], sizes = [8, 8], strides = [1, 1]} : vector<8x96xf32> to vector<8x8xf32>
    %74 = vector.extract_strided_slice %30 {offsets = [0, 48], sizes = [8, 8], strides = [1, 1]} : vector<8x96xf32> to vector<8x8xf32>
    %75 = vector.extract_strided_slice %30 {offsets = [0, 80], sizes = [8, 8], strides = [1, 1]} : vector<8x96xf32> to vector<8x8xf32>
    %cst_30 = arith.constant dense<0.000000e+00> : vector<8x8xf32>
    %76 = tpu.matmul %73, %74, %cst_30 {dimension_numbers = #tpu.dot_dimension_numbers<[1], [1], [0], [0], [0, 0, 1, 0], [], []>} : vector<8x8xf32>, vector<8x8xf32>, vector<8x8xf32> -> vector<8x8xf32>
    %cst_31 = arith.constant 0.353553385 : f32
    %77 = vector.broadcast %cst_31 : f32 to vector<8x8xf32>
    %78 = arith.mulf %76, %77 : vector<8x8xf32>
    %cst_32 = arith.constant dense<0xFF800000> : vector<8xf32>
    %79 = vector.multi_reduction <maximumf>, %78, %cst_32 [1] : vector<8x8xf32> to vector<8xf32>
    %80 = vector.shape_cast %79 : vector<8xf32> to vector<8x1xf32>
    %81 = vector.broadcast %80 : vector<8x1xf32> to vector<8x8xf32>
    %82 = arith.subf %78, %81 : vector<8x8xf32>
    %83 = math.exp %82 : vector<8x8xf32>
    %cst_33 = arith.constant dense<0.000000e+00> : vector<8xf32>
    %84 = vector.multi_reduction <add>, %83, %cst_33 [1] : vector<8x8xf32> to vector<8xf32>
    %85 = vector.shape_cast %84 : vector<8xf32> to vector<8x1xf32>
    %86 = tpu.reciprocal %85 {approx = true} : vector<8x1xf32> -> vector<8x1xf32>
    %87 = vector.broadcast %86 : vector<8x1xf32> to vector<8x8xf32>
    %88 = arith.mulf %83, %87 : vector<8x8xf32>
    %cst_34 = arith.constant dense<0.000000e+00> : vector<8x8xf32>
    %89 = tpu.matmul %88, %75, %cst_34 {dimension_numbers = #tpu.dot_dimension_numbers<[1], [0], [0], [1], [0, 0, 1, 1], [], []>} : vector<8x8xf32>, vector<8x8xf32>, vector<8x8xf32> -> vector<8x8xf32>
    %90 = vector.extract_strided_slice %31 {offsets = [16, 0], sizes = [8, 32], strides = [1, 1]} : vector<32x32xf32> to vector<8x32xf32>
    %cst_35 = arith.constant dense<0.000000e+00> : vector<8x32xf32>
    %91 = tpu.matmul %89, %90, %cst_35 {dimension_numbers = #tpu.dot_dimension_numbers<[1], [0], [0], [1], [0, 0, 1, 1], [], []>} : vector<8x8xf32>, vector<8x32xf32>, vector<8x32xf32> -> vector<8x32xf32>
    %92 = arith.addf %72, %91 : vector<8x32xf32>
    %93 = vector.extract_strided_slice %30 {offsets = [0, 24], sizes = [8, 8], strides = [1, 1]} : vector<8x96xf32> to vector<8x8xf32>
    %94 = vector.extract_strided_slice %30 {offsets = [0, 56], sizes = [8, 8], strides = [1, 1]} : vector<8x96xf32> to vector<8x8xf32>
    %95 = vector.extract_strided_slice %30 {offsets = [0, 88], sizes = [8, 8], strides = [1, 1]} : vector<8x96xf32> to vector<8x8xf32>
    %cst_36 = arith.constant dense<0.000000e+00> : vector<8x8xf32>
    %96 = tpu.matmul %93, %94, %cst_36 {dimension_numbers = #tpu.dot_dimension_numbers<[1], [1], [0], [0], [0, 0, 1, 0], [], []>} : vector<8x8xf32>, vector<8x8xf32>, vector<8x8xf32> -> vector<8x8xf32>
    %cst_37 = arith.constant 0.353553385 : f32
    %97 = vector.broadcast %cst_37 : f32 to vector<8x8xf32>
    %98 = arith.mulf %96, %97 : vector<8x8xf32>
    %cst_38 = arith.constant dense<0xFF800000> : vector<8xf32>
    %99 = vector.multi_reduction <maximumf>, %98, %cst_38 [1] : vector<8x8xf32> to vector<8xf32>
    %100 = vector.shape_cast %99 : vector<8xf32> to vector<8x1xf32>
    %101 = vector.broadcast %100 : vector<8x1xf32> to vector<8x8xf32>
    %102 = arith.subf %98, %101 : vector<8x8xf32>
    %103 = math.exp %102 : vector<8x8xf32>
    %cst_39 = arith.constant dense<0.000000e+00> : vector<8xf32>
    %104 = vector.multi_reduction <add>, %103, %cst_39 [1] : vector<8x8xf32> to vector<8xf32>
    %105 = vector.shape_cast %104 : vector<8xf32> to vector<8x1xf32>
    %106 = tpu.reciprocal %105 {approx = true} : vector<8x1xf32> -> vector<8x1xf32>
    %107 = vector.broadcast %106 : vector<8x1xf32> to vector<8x8xf32>
    %108 = arith.mulf %103, %107 : vector<8x8xf32>
    %cst_40 = arith.constant dense<0.000000e+00> : vector<8x8xf32>
    %109 = tpu.matmul %108, %95, %cst_40 {dimension_numbers = #tpu.dot_dimension_numbers<[1], [0], [0], [1], [0, 0, 1, 1], [], []>} : vector<8x8xf32>, vector<8x8xf32>, vector<8x8xf32> -> vector<8x8xf32>
    %110 = vector.extract_strided_slice %31 {offsets = [24, 0], sizes = [8, 32], strides = [1, 1]} : vector<32x32xf32> to vector<8x32xf32>
    %cst_41 = arith.constant dense<0.000000e+00> : vector<8x32xf32>
    %111 = tpu.matmul %109, %110, %cst_41 {dimension_numbers = #tpu.dot_dimension_numbers<[1], [0], [0], [1], [0, 0, 1, 1], [], []>} : vector<8x8xf32>, vector<8x32xf32>, vector<8x32xf32> -> vector<8x32xf32>
    %112 = arith.addf %92, %111 : vector<8x32xf32>
    %c0_42 = arith.constant 0 : index
    %c0_43 = arith.constant 0 : index
    %113 = vector.load %arg7[%c0_42, %c0_43] : memref<1x32xf32, #tpu.memory_space<vmem>>, vector<1x32xf32>
    %114 = vector.broadcast %113 : vector<1x32xf32> to vector<8x32xf32>
    %115 = arith.addf %112, %114 : vector<8x32xf32>
    %116 = arith.addf %115, %1 : vector<8x32xf32>
    %cst_44 = arith.constant dense<0.000000e+00> : vector<8xf32>
    %117 = vector.multi_reduction <add>, %116, %cst_44 [1] : vector<8x32xf32> to vector<8xf32>
    %118 = vector.shape_cast %117 : vector<8xf32> to vector<8x1xf32>
    %cst_45 = arith.constant 3.200000e+01 : f32
    %119 = vector.broadcast %cst_45 : f32 to vector<8x1xf32>
    %120 = arith.divf %118, %119 : vector<8x1xf32>
    %121 = vector.broadcast %120 : vector<8x1xf32> to vector<8x32xf32>
    %122 = arith.subf %116, %121 : vector<8x32xf32>
    %123 = arith.mulf %122, %122 : vector<8x32xf32>
    %cst_46 = arith.constant dense<0.000000e+00> : vector<8xf32>
    %124 = vector.multi_reduction <add>, %123, %cst_46 [1] : vector<8x32xf32> to vector<8xf32>
    %125 = vector.shape_cast %124 : vector<8xf32> to vector<8x1xf32>
    %cst_47 = arith.constant 3.200000e+01 : f32
    %126 = vector.broadcast %cst_47 : f32 to vector<8x1xf32>
    %127 = arith.divf %125, %126 : vector<8x1xf32>
    %128 = vector.broadcast %120 : vector<8x1xf32> to vector<8x32xf32>
    %129 = arith.subf %116, %128 : vector<8x32xf32>
    %cst_48 = arith.constant 9.99999997E-7 : f32
    %130 = vector.broadcast %cst_48 : f32 to vector<8x1xf32>
    %131 = arith.addf %127, %130 : vector<8x1xf32>
    %132 = math.rsqrt %131 : vector<8x1xf32>
    %133 = vector.broadcast %132 : vector<8x1xf32> to vector<8x32xf32>
    %134 = arith.mulf %129, %133 : vector<8x32xf32>
    %c0_49 = arith.constant 0 : index
    %c0_50 = arith.constant 0 : index
    %135 = vector.load %arg8[%c0_49, %c0_50] : memref<1x32xf32, #tpu.memory_space<vmem>>, vector<1x32xf32>
    %136 = vector.broadcast %135 : vector<1x32xf32> to vector<8x32xf32>
    %137 = arith.mulf %134, %136 : vector<8x32xf32>
    %c0_51 = arith.constant 0 : index
    %c0_52 = arith.constant 0 : index
    %138 = vector.load %arg9[%c0_51, %c0_52] : memref<1x32xf32, #tpu.memory_space<vmem>>, vector<1x32xf32>
    %139 = vector.broadcast %138 : vector<1x32xf32> to vector<8x32xf32>
    %140 = arith.addf %137, %139 : vector<8x32xf32>
    %cst_53 = arith.constant dense<0.000000e+00> : vector<8xf32>
    %141 = vector.multi_reduction <add>, %140, %cst_53 [1] : vector<8x32xf32> to vector<8xf32>
    %142 = vector.shape_cast %141 : vector<8xf32> to vector<8x1xf32>
    %cst_54 = arith.constant 3.200000e+01 : f32
    %143 = vector.broadcast %cst_54 : f32 to vector<8x1xf32>
    %144 = arith.divf %142, %143 : vector<8x1xf32>
    %145 = vector.broadcast %144 : vector<8x1xf32> to vector<8x32xf32>
    %146 = arith.subf %140, %145 : vector<8x32xf32>
    %147 = arith.mulf %146, %146 : vector<8x32xf32>
    %cst_55 = arith.constant dense<0.000000e+00> : vector<8xf32>
    %148 = vector.multi_reduction <add>, %147, %cst_55 [1] : vector<8x32xf32> to vector<8xf32>
    %149 = vector.shape_cast %148 : vector<8xf32> to vector<8x1xf32>
    %cst_56 = arith.constant 3.200000e+01 : f32
    %150 = vector.broadcast %cst_56 : f32 to vector<8x1xf32>
    %151 = arith.divf %149, %150 : vector<8x1xf32>
    %152 = vector.broadcast %144 : vector<8x1xf32> to vector<8x32xf32>
    %153 = arith.subf %140, %152 : vector<8x32xf32>
    %cst_57 = arith.constant 9.99999974E-6 : f32
    %154 = vector.broadcast %cst_57 : f32 to vector<8x1xf32>
    %155 = arith.addf %151, %154 : vector<8x1xf32>
    %156 = math.rsqrt %155 : vector<8x1xf32>
    %157 = vector.broadcast %156 : vector<8x1xf32> to vector<8x32xf32>
    %158 = arith.mulf %153, %157 : vector<8x32xf32>
    %c0_58 = arith.constant 0 : index
    %c0_59 = arith.constant 0 : index
    %159 = vector.load %arg10[%c0_58, %c0_59] : memref<1x32xf32, #tpu.memory_space<vmem>>, vector<1x32xf32>
    %160 = vector.broadcast %159 : vector<1x32xf32> to vector<8x32xf32>
    %161 = arith.mulf %158, %160 : vector<8x32xf32>
    %c0_60 = arith.constant 0 : index
    %c0_61 = arith.constant 0 : index
    %162 = vector.load %arg11[%c0_60, %c0_61] : memref<1x32xf32, #tpu.memory_space<vmem>>, vector<1x32xf32>
    %163 = vector.broadcast %162 : vector<1x32xf32> to vector<8x32xf32>
    %164 = arith.addf %161, %163 : vector<8x32xf32>
    %cst_62 = arith.constant -2.000000e+00 : f32
    %165 = vector.broadcast %cst_62 : f32 to vector<8x32xf32>
    %166 = arith.subf %164, %165 : vector<8x32xf32>
    %cst_63 = arith.constant 5.000000e-01 : f32
    %167 = vector.broadcast %cst_63 : f32 to vector<8x32xf32>
    %168 = arith.mulf %166, %167 : vector<8x32xf32>
    %169 = math.tanh %168 : vector<8x32xf32>
    %170 = arith.mulf %169, %169 : vector<8x32xf32>
    %cst_64 = arith.constant 1.000000e+00 : f32
    %171 = vector.broadcast %cst_64 : f32 to vector<8x32xf32>
    %172 = arith.subf %171, %170 : vector<8x32xf32>
    %cst_65 = arith.constant -1.42857146 : f32
    %173 = vector.broadcast %cst_65 : f32 to vector<8x32xf32>
    %174 = arith.subf %164, %173 : vector<8x32xf32>
    %cst_66 = arith.constant 5.000000e-01 : f32
    %175 = vector.broadcast %cst_66 : f32 to vector<8x32xf32>
    %176 = arith.mulf %174, %175 : vector<8x32xf32>
    %177 = math.tanh %176 : vector<8x32xf32>
    %178 = arith.mulf %177, %177 : vector<8x32xf32>
    %cst_67 = arith.constant 1.000000e+00 : f32
    %179 = vector.broadcast %cst_67 : f32 to vector<8x32xf32>
    %180 = arith.subf %179, %178 : vector<8x32xf32>
    %cst_68 = arith.constant -0.857142865 : f32
    %181 = vector.broadcast %cst_68 : f32 to vector<8x32xf32>
    %182 = arith.subf %164, %181 : vector<8x32xf32>
    %cst_69 = arith.constant 5.000000e-01 : f32
    %183 = vector.broadcast %cst_69 : f32 to vector<8x32xf32>
    %184 = arith.mulf %182, %183 : vector<8x32xf32>
    %185 = math.tanh %184 : vector<8x32xf32>
    %186 = arith.mulf %185, %185 : vector<8x32xf32>
    %cst_70 = arith.constant 1.000000e+00 : f32
    %187 = vector.broadcast %cst_70 : f32 to vector<8x32xf32>
    %188 = arith.subf %187, %186 : vector<8x32xf32>
    %cst_71 = arith.constant -0.285714179 : f32
    %189 = vector.broadcast %cst_71 : f32 to vector<8x32xf32>
    %190 = arith.subf %164, %189 : vector<8x32xf32>
    %cst_72 = arith.constant 5.000000e-01 : f32
    %191 = vector.broadcast %cst_72 : f32 to vector<8x32xf32>
    %192 = arith.mulf %190, %191 : vector<8x32xf32>
    %193 = math.tanh %192 : vector<8x32xf32>
    %194 = arith.mulf %193, %193 : vector<8x32xf32>
    %cst_73 = arith.constant 1.000000e+00 : f32
    %195 = vector.broadcast %cst_73 : f32 to vector<8x32xf32>
    %196 = arith.subf %195, %194 : vector<8x32xf32>
    %cst_74 = arith.constant 0.285714388 : f32
    %197 = vector.broadcast %cst_74 : f32 to vector<8x32xf32>
    %198 = arith.subf %164, %197 : vector<8x32xf32>
    %cst_75 = arith.constant 5.000000e-01 : f32
    %199 = vector.broadcast %cst_75 : f32 to vector<8x32xf32>
    %200 = arith.mulf %198, %199 : vector<8x32xf32>
    %201 = math.tanh %200 : vector<8x32xf32>
    %202 = arith.mulf %201, %201 : vector<8x32xf32>
    %cst_76 = arith.constant 1.000000e+00 : f32
    %203 = vector.broadcast %cst_76 : f32 to vector<8x32xf32>
    %204 = arith.subf %203, %202 : vector<8x32xf32>
    %cst_77 = arith.constant 0.857142925 : f32
    %205 = vector.broadcast %cst_77 : f32 to vector<8x32xf32>
    %206 = arith.subf %164, %205 : vector<8x32xf32>
    %cst_78 = arith.constant 5.000000e-01 : f32
    %207 = vector.broadcast %cst_78 : f32 to vector<8x32xf32>
    %208 = arith.mulf %206, %207 : vector<8x32xf32>
    %209 = math.tanh %208 : vector<8x32xf32>
    %210 = arith.mulf %209, %209 : vector<8x32xf32>
    %cst_79 = arith.constant 1.000000e+00 : f32
    %211 = vector.broadcast %cst_79 : f32 to vector<8x32xf32>
    %212 = arith.subf %211, %210 : vector<8x32xf32>
    %cst_80 = arith.constant 1.4285717 : f32
    %213 = vector.broadcast %cst_80 : f32 to vector<8x32xf32>
    %214 = arith.subf %164, %213 : vector<8x32xf32>
    %cst_81 = arith.constant 5.000000e-01 : f32
    %215 = vector.broadcast %cst_81 : f32 to vector<8x32xf32>
    %216 = arith.mulf %214, %215 : vector<8x32xf32>
    %217 = math.tanh %216 : vector<8x32xf32>
    %218 = arith.mulf %217, %217 : vector<8x32xf32>
    %cst_82 = arith.constant 1.000000e+00 : f32
    %219 = vector.broadcast %cst_82 : f32 to vector<8x32xf32>
    %220 = arith.subf %219, %218 : vector<8x32xf32>
    %cst_83 = arith.constant 2.000000e+00 : f32
    %221 = vector.broadcast %cst_83 : f32 to vector<8x32xf32>
    %222 = arith.subf %164, %221 : vector<8x32xf32>
    %cst_84 = arith.constant 5.000000e-01 : f32
    %223 = vector.broadcast %cst_84 : f32 to vector<8x32xf32>
    %224 = arith.mulf %222, %223 : vector<8x32xf32>
    %225 = math.tanh %224 : vector<8x32xf32>
    %226 = arith.mulf %225, %225 : vector<8x32xf32>
    %cst_85 = arith.constant 1.000000e+00 : f32
    %227 = vector.broadcast %cst_85 : f32 to vector<8x32xf32>
    %228 = arith.subf %227, %226 : vector<8x32xf32>
    %229 = tpu.concatenate %172, %180, %188, %196, %204, %212, %220, %228 in 1 : vector<8x32xf32>, vector<8x32xf32>, vector<8x32xf32>, vector<8x32xf32>, vector<8x32xf32>, vector<8x32xf32>, vector<8x32xf32>, vector<8x32xf32> -> vector<8x256xf32>
    %c0_86 = arith.constant 0 : index
    %c0_87 = arith.constant 0 : index
    %230 = vector.load %arg12[%c0_86, %c0_87] : memref<256x32xf32, #tpu.memory_space<vmem>>, vector<256x32xf32>
    %cst_88 = arith.constant dense<0.000000e+00> : vector<8x32xf32>
    %231 = tpu.matmul %229, %230, %cst_88 {dimension_numbers = #tpu.dot_dimension_numbers<[1], [0], [0], [1], [0, 0, 1, 1], [], []>} : vector<8x256xf32>, vector<256x32xf32>, vector<8x32xf32> -> vector<8x32xf32>
    %cst_89 = arith.constant dense<0.000000e+00> : vector<8xf32>
    %232 = vector.multi_reduction <add>, %231, %cst_89 [1] : vector<8x32xf32> to vector<8xf32>
    %233 = vector.shape_cast %232 : vector<8xf32> to vector<8x1xf32>
    %cst_90 = arith.constant 3.200000e+01 : f32
    %234 = vector.broadcast %cst_90 : f32 to vector<8x1xf32>
    %235 = arith.divf %233, %234 : vector<8x1xf32>
    %236 = vector.broadcast %235 : vector<8x1xf32> to vector<8x32xf32>
    %237 = arith.subf %231, %236 : vector<8x32xf32>
    %238 = arith.mulf %237, %237 : vector<8x32xf32>
    %cst_91 = arith.constant dense<0.000000e+00> : vector<8xf32>
    %239 = vector.multi_reduction <add>, %238, %cst_91 [1] : vector<8x32xf32> to vector<8xf32>
    %240 = vector.shape_cast %239 : vector<8xf32> to vector<8x1xf32>
    %cst_92 = arith.constant 3.200000e+01 : f32
    %241 = vector.broadcast %cst_92 : f32 to vector<8x1xf32>
    %242 = arith.divf %240, %241 : vector<8x1xf32>
    %243 = vector.broadcast %235 : vector<8x1xf32> to vector<8x32xf32>
    %244 = arith.subf %231, %243 : vector<8x32xf32>
    %cst_93 = arith.constant 9.99999974E-6 : f32
    %245 = vector.broadcast %cst_93 : f32 to vector<8x1xf32>
    %246 = arith.addf %242, %245 : vector<8x1xf32>
    %247 = math.rsqrt %246 : vector<8x1xf32>
    %248 = vector.broadcast %247 : vector<8x1xf32> to vector<8x32xf32>
    %249 = arith.mulf %244, %248 : vector<8x32xf32>
    %c0_94 = arith.constant 0 : index
    %c0_95 = arith.constant 0 : index
    %250 = vector.load %arg13[%c0_94, %c0_95] : memref<1x32xf32, #tpu.memory_space<vmem>>, vector<1x32xf32>
    %251 = vector.broadcast %250 : vector<1x32xf32> to vector<8x32xf32>
    %252 = arith.mulf %249, %251 : vector<8x32xf32>
    %c0_96 = arith.constant 0 : index
    %c0_97 = arith.constant 0 : index
    %253 = vector.load %arg14[%c0_96, %c0_97] : memref<1x32xf32, #tpu.memory_space<vmem>>, vector<1x32xf32>
    %254 = vector.broadcast %253 : vector<1x32xf32> to vector<8x32xf32>
    %255 = arith.addf %252, %254 : vector<8x32xf32>
    %cst_98 = arith.constant -2.000000e+00 : f32
    %256 = vector.broadcast %cst_98 : f32 to vector<8x32xf32>
    %257 = arith.subf %255, %256 : vector<8x32xf32>
    %cst_99 = arith.constant 5.000000e-01 : f32
    %258 = vector.broadcast %cst_99 : f32 to vector<8x32xf32>
    %259 = arith.mulf %257, %258 : vector<8x32xf32>
    %260 = math.tanh %259 : vector<8x32xf32>
    %261 = arith.mulf %260, %260 : vector<8x32xf32>
    %cst_100 = arith.constant 1.000000e+00 : f32
    %262 = vector.broadcast %cst_100 : f32 to vector<8x32xf32>
    %263 = arith.subf %262, %261 : vector<8x32xf32>
    %cst_101 = arith.constant -1.42857146 : f32
    %264 = vector.broadcast %cst_101 : f32 to vector<8x32xf32>
    %265 = arith.subf %255, %264 : vector<8x32xf32>
    %cst_102 = arith.constant 5.000000e-01 : f32
    %266 = vector.broadcast %cst_102 : f32 to vector<8x32xf32>
    %267 = arith.mulf %265, %266 : vector<8x32xf32>
    %268 = math.tanh %267 : vector<8x32xf32>
    %269 = arith.mulf %268, %268 : vector<8x32xf32>
    %cst_103 = arith.constant 1.000000e+00 : f32
    %270 = vector.broadcast %cst_103 : f32 to vector<8x32xf32>
    %271 = arith.subf %270, %269 : vector<8x32xf32>
    %cst_104 = arith.constant -0.857142865 : f32
    %272 = vector.broadcast %cst_104 : f32 to vector<8x32xf32>
    %273 = arith.subf %255, %272 : vector<8x32xf32>
    %cst_105 = arith.constant 5.000000e-01 : f32
    %274 = vector.broadcast %cst_105 : f32 to vector<8x32xf32>
    %275 = arith.mulf %273, %274 : vector<8x32xf32>
    %276 = math.tanh %275 : vector<8x32xf32>
    %277 = arith.mulf %276, %276 : vector<8x32xf32>
    %cst_106 = arith.constant 1.000000e+00 : f32
    %278 = vector.broadcast %cst_106 : f32 to vector<8x32xf32>
    %279 = arith.subf %278, %277 : vector<8x32xf32>
    %cst_107 = arith.constant -0.285714179 : f32
    %280 = vector.broadcast %cst_107 : f32 to vector<8x32xf32>
    %281 = arith.subf %255, %280 : vector<8x32xf32>
    %cst_108 = arith.constant 5.000000e-01 : f32
    %282 = vector.broadcast %cst_108 : f32 to vector<8x32xf32>
    %283 = arith.mulf %281, %282 : vector<8x32xf32>
    %284 = math.tanh %283 : vector<8x32xf32>
    %285 = arith.mulf %284, %284 : vector<8x32xf32>
    %cst_109 = arith.constant 1.000000e+00 : f32
    %286 = vector.broadcast %cst_109 : f32 to vector<8x32xf32>
    %287 = arith.subf %286, %285 : vector<8x32xf32>
    %cst_110 = arith.constant 0.285714388 : f32
    %288 = vector.broadcast %cst_110 : f32 to vector<8x32xf32>
    %289 = arith.subf %255, %288 : vector<8x32xf32>
    %cst_111 = arith.constant 5.000000e-01 : f32
    %290 = vector.broadcast %cst_111 : f32 to vector<8x32xf32>
    %291 = arith.mulf %289, %290 : vector<8x32xf32>
    %292 = math.tanh %291 : vector<8x32xf32>
    %293 = arith.mulf %292, %292 : vector<8x32xf32>
    %cst_112 = arith.constant 1.000000e+00 : f32
    %294 = vector.broadcast %cst_112 : f32 to vector<8x32xf32>
    %295 = arith.subf %294, %293 : vector<8x32xf32>
    %cst_113 = arith.constant 0.857142925 : f32
    %296 = vector.broadcast %cst_113 : f32 to vector<8x32xf32>
    %297 = arith.subf %255, %296 : vector<8x32xf32>
    %cst_114 = arith.constant 5.000000e-01 : f32
    %298 = vector.broadcast %cst_114 : f32 to vector<8x32xf32>
    %299 = arith.mulf %297, %298 : vector<8x32xf32>
    %300 = math.tanh %299 : vector<8x32xf32>
    %301 = arith.mulf %300, %300 : vector<8x32xf32>
    %cst_115 = arith.constant 1.000000e+00 : f32
    %302 = vector.broadcast %cst_115 : f32 to vector<8x32xf32>
    %303 = arith.subf %302, %301 : vector<8x32xf32>
    %cst_116 = arith.constant 1.4285717 : f32
    %304 = vector.broadcast %cst_116 : f32 to vector<8x32xf32>
    %305 = arith.subf %255, %304 : vector<8x32xf32>
    %cst_117 = arith.constant 5.000000e-01 : f32
    %306 = vector.broadcast %cst_117 : f32 to vector<8x32xf32>
    %307 = arith.mulf %305, %306 : vector<8x32xf32>
    %308 = math.tanh %307 : vector<8x32xf32>
    %309 = arith.mulf %308, %308 : vector<8x32xf32>
    %cst_118 = arith.constant 1.000000e+00 : f32
    %310 = vector.broadcast %cst_118 : f32 to vector<8x32xf32>
    %311 = arith.subf %310, %309 : vector<8x32xf32>
    %cst_119 = arith.constant 2.000000e+00 : f32
    %312 = vector.broadcast %cst_119 : f32 to vector<8x32xf32>
    %313 = arith.subf %255, %312 : vector<8x32xf32>
    %cst_120 = arith.constant 5.000000e-01 : f32
    %314 = vector.broadcast %cst_120 : f32 to vector<8x32xf32>
    %315 = arith.mulf %313, %314 : vector<8x32xf32>
    %316 = math.tanh %315 : vector<8x32xf32>
    %317 = arith.mulf %316, %316 : vector<8x32xf32>
    %cst_121 = arith.constant 1.000000e+00 : f32
    %318 = vector.broadcast %cst_121 : f32 to vector<8x32xf32>
    %319 = arith.subf %318, %317 : vector<8x32xf32>
    %320 = tpu.concatenate %263, %271, %279, %287, %295, %303, %311, %319 in 1 : vector<8x32xf32>, vector<8x32xf32>, vector<8x32xf32>, vector<8x32xf32>, vector<8x32xf32>, vector<8x32xf32>, vector<8x32xf32>, vector<8x32xf32> -> vector<8x256xf32>
    %c0_122 = arith.constant 0 : index
    %c0_123 = arith.constant 0 : index
    %321 = vector.load %arg15[%c0_122, %c0_123] : memref<256x32xf32, #tpu.memory_space<vmem>>, vector<256x32xf32>
    %cst_124 = arith.constant dense<0.000000e+00> : vector<8x32xf32>
    %322 = tpu.matmul %320, %321, %cst_124 {dimension_numbers = #tpu.dot_dimension_numbers<[1], [0], [0], [1], [0, 0, 1, 1], [], []>} : vector<8x256xf32>, vector<256x32xf32>, vector<8x32xf32> -> vector<8x32xf32>
    %c0_125 = arith.constant 0 : index
    %c0_126 = arith.constant 0 : index
    %323 = vector.load %arg16[%c0_125, %c0_126] : memref<32x32xf32, #tpu.memory_space<vmem>>, vector<32x32xf32>
    %cst_127 = arith.constant dense<0.000000e+00> : vector<8x32xf32>
    %324 = tpu.matmul %322, %323, %cst_127 {dimension_numbers = #tpu.dot_dimension_numbers<[1], [0], [0], [1], [0, 0, 1, 1], [], []>} : vector<8x32xf32>, vector<32x32xf32>, vector<8x32xf32> -> vector<8x32xf32>
    %c0_128 = arith.constant 0 : index
    %c0_129 = arith.constant 0 : index
    %325 = vector.load %arg17[%c0_128, %c0_129] : memref<1x32xf32, #tpu.memory_space<vmem>>, vector<1x32xf32>
    %326 = vector.broadcast %325 : vector<1x32xf32> to vector<8x32xf32>
    %327 = arith.addf %324, %326 : vector<8x32xf32>
    %328 = arith.addf %327, %116 : vector<8x32xf32>
    %c0_130 = arith.constant 0 : index
    %c0_131 = arith.constant 0 : index
    %c0_132 = arith.constant 0 : index
    %329 = vector.load %arg18[%c0_130, %c0_131, %c0_132] : memref<1x8x32xf32, #tpu.memory_space<vmem>>, vector<1x8x32xf32>
    %330 = vector.shape_cast %329 : vector<1x8x32xf32> to vector<8x32xf32>
    %331 = vector.shape_cast %328 : vector<8x32xf32> to vector<1x8x32xf32>
    tpu.vector_store %arg18[%c0_130, %c0_131, %c0_132], %331 {strides = array<i32>} : memref<1x8x32xf32, #tpu.memory_space<vmem>>, vector<1x8x32xf32>,
    return
  }
  func.func @transform_0(%arg0: i32) -> (i32, i32, i32) {
    %c0_i32 = arith.constant 0 : i32
    %c0_i32_0 = arith.constant 0 : i32
    %c0_i32_1 = arith.constant 0 : i32
    return %arg0, %c0_i32, %c0_i32_0 : i32, i32, i32
  }
  func.func @transform_1(%arg0: i32) -> (i32, i32) {
    %c0_i32 = arith.constant 0 : i32
    %c0_i32_0 = arith.constant 0 : i32
    %c0_i32_1 = arith.constant 0 : i32
    return %c0_i32, %c0_i32_0 : i32, i32
  }
  func.func @transform_2(%arg0: i32) -> (i32, i32) {
    %c0_i32 = arith.constant 0 : i32
    %c0_i32_0 = arith.constant 0 : i32
    %c0_i32_1 = arith.constant 0 : i32
    return %c0_i32, %c0_i32_0 : i32, i32
  }
  func.func @transform_3(%arg0: i32) -> (i32, i32) {
    %c0_i32 = arith.constant 0 : i32
    %c0_i32_0 = arith.constant 0 : i32
    %c0_i32_1 = arith.constant 0 : i32
    return %c0_i32, %c0_i32_0 : i32, i32
  }
  func.func @transform_4(%arg0: i32) -> (i32, i32) {
    %c0_i32 = arith.constant 0 : i32
    %c0_i32_0 = arith.constant 0 : i32
    %c0_i32_1 = arith.constant 0 : i32
    return %c0_i32, %c0_i32_0 : i32, i32
  }
  func.func @transform_5(%arg0: i32) -> (i32, i32) {
    %c0_i32 = arith.constant 0 : i32
    %c0_i32_0 = arith.constant 0 : i32
    %c0_i32_1 = arith.constant 0 : i32
    return %c0_i32, %c0_i32_0 : i32, i32
  }
  func.func @transform_6(%arg0: i32) -> (i32, i32) {
    %c0_i32 = arith.constant 0 : i32
    %c0_i32_0 = arith.constant 0 : i32
    %c0_i32_1 = arith.constant 0 : i32
    return %c0_i32, %c0_i32_0 : i32, i32
  }
  func.func @transform_7(%arg0: i32) -> (i32, i32) {
    %c0_i32 = arith.constant 0 : i32
    %c0_i32_0 = arith.constant 0 : i32
    %c0_i32_1 = arith.constant 0 : i32
    return %c0_i32, %c0_i32_0 : i32, i32
  }
  func.func @transform_8(%arg0: i32) -> (i32, i32) {
    %c0_i32 = arith.constant 0 : i32
    %c0_i32_0 = arith.constant 0 : i32
    %c0_i32_1 = arith.constant 0 : i32
    return %c0_i32, %c0_i32_0 : i32, i32
  }
  func.func @transform_9(%arg0: i32) -> (i32, i32) {
    %c0_i32 = arith.constant 0 : i32
    %c0_i32_0 = arith.constant 0 : i32
    %c0_i32_1 = arith.constant 0 : i32
    return %c0_i32, %c0_i32_0 : i32, i32
  }
  func.func @transform_10(%arg0: i32) -> (i32, i32) {
    %c0_i32 = arith.constant 0 : i32
    %c0_i32_0 = arith.constant 0 : i32
    %c0_i32_1 = arith.constant 0 : i32
    return %c0_i32, %c0_i32_0 : i32, i32
  }
  func.func @transform_11(%arg0: i32) -> (i32, i32) {
    %c0_i32 = arith.constant 0 : i32
    %c0_i32_0 = arith.constant 0 : i32
    %c0_i32_1 = arith.constant 0 : i32
    return %c0_i32, %c0_i32_0 : i32, i32
  }
  func.func @transform_12(%arg0: i32) -> (i32, i32) {
    %c0_i32 = arith.constant 0 : i32
    %c0_i32_0 = arith.constant 0 : i32
    %c0_i32_1 = arith.constant 0 : i32
    return %c0_i32, %c0_i32_0 : i32, i32
  }
  func.func @transform_13(%arg0: i32) -> (i32, i32) {
    %c0_i32 = arith.constant 0 : i32
    %c0_i32_0 = arith.constant 0 : i32
    %c0_i32_1 = arith.constant 0 : i32
    return %c0_i32, %c0_i32_0 : i32, i32
  }
  func.func @transform_14(%arg0: i32) -> (i32, i32) {
    %c0_i32 = arith.constant 0 : i32
    %c0_i32_0 = arith.constant 0 : i32
    %c0_i32_1 = arith.constant 0 : i32
    return %c0_i32, %c0_i32_0 : i32, i32
  }
  func.func @transform_15(%arg0: i32) -> (i32, i32) {
    %c0_i32 = arith.constant 0 : i32
    %c0_i32_0 = arith.constant 0 : i32
    %c0_i32_1 = arith.constant 0 : i32
    return %c0_i32, %c0_i32_0 : i32, i32
  }
  func.func @transform_16(%arg0: i32) -> (i32, i32) {
    %c0_i32 = arith.constant 0 : i32
    %c0_i32_0 = arith.constant 0 : i32
    %c0_i32_1 = arith.constant 0 : i32
    return %c0_i32, %c0_i32_0 : i32, i32
  }
  func.func @transform_17(%arg0: i32) -> (i32, i32, i32) {
    %c0_i32 = arith.constant 0 : i32
    %c0_i32_0 = arith.constant 0 : i32
    %c0_i32_1 = arith.constant 0 : i32
    return %arg0, %c0_i32, %c0_i32_0 : i32, i32, i32
  }
}

</mosaic_0001>

<bundles_post_ra>
// kernel: encoder_layer_forward.1
= control target key start
LH: loop header
LB: loop body
LE: loop exit
PB: predicated region body
PF: predicated region fallthrough
CT: control target
= control target key end

     0   :  { %s3237_s0 = inlined_call_operand.vmem [shape: f32[2,8,32], index: 0, kind: input, shape index: {}]   ;;  %s3238_s1 = inlined_call_operand.vmem [shape: f32[1,32], index: 1, kind: input, shape index: {}]   ;;  %s3239_s2 = inlined_call_operand.vmem [shape: f32[1,32], index: 2, kind: input, shape index: {}]   ;;  %s3240_s3 = inlined_call_operand.vmem [shape: f32[32,96], index: 3, kind: input, shape index: {}]   ;;  %s3241_s4 = inlined_call_operand.vmem [shape: f32[1,96], index: 4, kind: input, shape index: {}]   ;;  %s3242_s5 = inlined_call_operand.vmem [shape: f32[32,32], index: 5, kind: input, shape index: {}]   ;;  %s3243_s6 = inlined_call_operand.vmem [shape: f32[1,32], index: 6, kind: input, shape index: {}]   ;;  %s3244_s7 = inlined_call_operand.vmem [shape: f32[1,32], index: 7, kind: input, shape index: {}]   ;;  %s3245_s8 = inlined_call_operand.vmem [shape: f32[1,32], index: 8, kind: input, shape index: {}]   ;;  %s3246_s9 = inlined_call_operand.vmem [shape: f32[1,32], index: 9, kind: input, shape index: {}]   ;;  %s3247_s10 = inlined_call_operand.vmem [shape: f32[1,32], index: 10, kind: input, shape index: {}]   ;;  %s3248_s11 = inlined_call_operand.hbm [shape: f32[256,32], index: 11, kind: input, shape index: {}]   ;;  %s3249_s12 = inlined_call_operand.vmem [shape: f32[1,32], index: 12, kind: input, shape index: {}]   ;;  %s3250_s13 = inlined_call_operand.vmem [shape: f32[1,32], index: 13, kind: input, shape index: {}]   ;;  %s3251_s14 = inlined_call_operand.hbm [shape: f32[256,32], index: 14, kind: input, shape index: {}]   ;;  %s3252_s15 = inlined_call_operand.vmem [shape: f32[32,32], index: 15, kind: input, shape index: {}]   ;;  %s3253_s16 = inlined_call_operand.vmem [shape: f32[1,32], index: 16, kind: input, shape index: {}]   ;;  %s3254_s17 = inlined_call_operand.hbm [shape: f32[2,8,32], index: 17, kind: output, shape index: {}]  }
   0x1   :  { %3261 = sst [smem:[#allocation16_spill]] %s3237_s0 }
   0x2   :  { %3262 = sst [smem:[#allocation17_spill]] %s3238_s1 }
   0x3   :  { %3263 = sst [smem:[#allocation18_spill]] %s3239_s2 }
   0x4   :  { %22 = vsyncpa [#allocation3], 0 }
   0x5   :  { %23 = vsyncpa [#allocation6], 0 }
   0x6   :  { %24 = vsyncpa [#allocation4], 0 }
   0x7   :  { %26 = vsyncpa [#allocation4 + $0x1], 0  ;;  %s2913_s24 = smov 0   ;;  %s2915_s25 = smov 0  }
   0x8   :  { %s2917_s26 = smov 0   ;;  %s2919_s27 = smov 0  }
   0x9 LB: > { %3264 = sst [smem:[#allocation11_spill]] %s2790_s24  ;;  %s2934_s28 = sadd.s32 4294967295, %s2802_s27   ;;  %s2802_s27 = sphi %s2919_s27, %s3283_s27   ;;  %s2798_s26 = sphi %s2917_s26, %s3285_s26   ;;  %s2794_s25 = sphi %s2915_s25, %s3287_s25   ;;  %s2790_s24 = sphi %s2913_s24, %s3286_s24  }
   0xa   : > { %3265 = sst [smem:[#allocation12_spill]] %s2798_s26  ;;  %s2275_s29 = sadd.s32 4294967294, %s2802_s27  }
   0xb   : > { %s2938_s0 = sadd.s32 1, %s2802_s27   ;;  %s401_s30 = sadd.s32 1, %s2798_s26 }
   0xc   : > { %3266 = sst [smem:[#allocation13_spill]] %s2938_s0  ;;  %s398_s18 = ssub.s32 %s2802_s27, %s2938_s0 }
   0xd   : > { %p411_p0 = scmp.ne.s32.totalorder %s2798_s26, %s2794_s25  ;;  %p399_p1 = scmp.eq.s32.totalorder %s398_s18, 0 }
   0xe   : > { %p412_p2 = scmp.eq.s32.totalorder %s2934_s28, 1  ;;  %p417_p3 = scmp.ne.s32.totalorder %s2794_s25, %s2790_s24 }
   0xf   : > { %p418_p4 = scmp.eq.s32.totalorder %s2275_s29, 1  ;;  %p2276_p7 = scmp.ge.s32.totalorder %s2802_s27, 1 }
  0x10   : > { %s2949_s19 = scalar_select %p399_p1, %s2798_s26, %s401_s30  }
  0x11   : > { %p2951_p5 = por %p412_p2, %p411_p0  ;;  %p2955_p6 = por %p418_p4, %p417_p3 }
  0x12   : > { %3267 = sst [smem:[#allocation14_spill]] %s2949_s19  ;;  %p425_p8 = scmp.lt.s32.totalorder %s2802_s27, 3 }
  0x13   : > { %s3269_s20 = scalar_select %p2955_p6, 1, 0 }
  0x14   : > { %p3259_p9 = scmp.eq.s32.totalorder %s2934_s28, 0  ;;  %p2962_p10 = pnand %p2276_p7, %p425_p8 }
  0x15   : > { %3270 = sst [smem:[#allocation15_spill]] %s3269_s20  ;;  %s2804_s22 = smov [#allocation2]  }
  0x16   : > { %s467_s23 = sshll.u32 %s2804_s22, 4  ;;  %p2530_p11 = pneg %p2962_p10  ;;  %s468_s23 = int_to_ptr.vmem [resolvable:$true] %s467_s23 }
  0x17   : > { %s2805_s30 = smov [#allocation5]   ;;  %s2693_s19 = scalar_lea.vmem %s468_s23, 4096 }
  0x18   : > { %p2970_p12 = pnand %p3259_p9, %p2530_p11  ;;  %s486_s18 = sshll.u32 %s2805_s30, 4  ;;  %s487_s18 = int_to_ptr.vmem [resolvable:$true] %s486_s18 }
  0x19   : > { %p2694_p0 = scmp.ne.s32.totalorder %s468_s23, %s2693_s19  ;;  %p2701_p3 = scmp.lt.s32.totalorder %s468_s23, %s468_s23 }
  0x1a   : > { %p2684_p13 = pneg %p2970_p12  ;;  %p2702_p4 = scmp.lt.s32.totalorder %s2693_s19, %s2693_s19 }
  0x1c   : > { %p2696_p1 = pnand %p2694_p0, %p2684_p13  ;;  %p2703_p7 = por %p2702_p4, %p2701_p3 }
  0x1e   : > { %p2697_p2 = pneg %p2696_p1 }
  0x20   : > { %p2704_p8 = pnand %p2703_p7, %p2697_p2 }
  0x22   : > { %2707 = shalt.err (!%p2704_p8)
}
  0x23   : > { %s2806_s22 = smov 128   ;;  %s2807_s26 = smov 8  }
  0x24   : > { %2533 = dma.hbm_to_vmem [thread:$0]  (!%p2970_p12), %s3248_s11, 4096, %s468_s23, [#allocation3], %s2806_s22, %s2806_s22, %s2807_s26  }
  0x25   : > { %s2719_s20 = scalar_lea.vmem %s487_s18, 4096  ;;  %p2727_p9 = scmp.lt.s32.totalorder %s487_s18, %s487_s18 }
  0x26   : > { %p2720_p11 = scmp.ne.s32.totalorder %s487_s18, %s2719_s20  ;;  %p2728_p6 = scmp.lt.s32.totalorder %s2719_s20, %s2719_s20 }
  0x28   : > { %p2722_p0 = pnand %p2720_p11, %p2684_p13  ;;  %p2729_p3 = por %p2728_p6, %p2727_p9 }
  0x2a   : > { %p2723_p1 = pneg %p2722_p0 }
  0x2c   : > { %p2730_p2 = pnand %p2729_p3, %p2723_p1 }
  0x2e   : > { %2733 = shalt.err (!%p2730_p2)
}
  0x2f   : > { %2536 = dma.hbm_to_vmem [thread:$0]  (!%p2970_p12), %s3251_s14, 4096, %s487_s18, [#allocation6], %s2806_s22, %s2806_s22, %s2807_s26  }
  0x30   : > { %515 = sbr.rel (%p2962_p10) target bundleno = 5139 (0x1413), region = 88  ;;  %p3273_p4 = scmp.eq.s32.totalorder (!%p2962_p10), %s2934_s28, 0 }
  0x35   : > { %2777 = dma.done.wait (%p3273_p4), [#allocation3], 4096   ;;  %p3274_p13 = pmov %p3273_p4 }
  0x36   : > { %p3275_p7 = pmov %p3273_p4 }
  0x37   : > { %2779 = vsyncadd (%p3274_p13), [#allocation3], 4294963200 }
  0x38   : > { %2781 = dma.done.wait (%p3275_p7), [#allocation6], 4096   ;;  %p3276_p6 = pmov %p3273_p4 }
  0x39   : > { %p570_p9 = scmp.lt.s32.totalorder %s2934_s28, 1  ;;  %s3277_s21 = sld [smem:[#allocation16_spill]]  ;;  %vm575_vm0 = vcmask 261120   ;;  %v609_v7 = vld [vmem:[%s3240_s3 + $0x18] sm:$0xff]  ;;  %v2808_v8 = vmov 0.0   ;;  %v608_v9 = vld [vmem:[%s3240_s3 + $0x10] sm:$0xff] }
  0x3a   : > { %2783 = vsyncadd (%p3276_p6), [#allocation6], 4294963200  ;;  %2438 = vmatprep.subr.mxu0 %v2808_v8  ;;  %vm2809_vm1 = vmmov 0   ;;  %2449 = vmatprep.subr.mxu1 %v2808_v8  ;;  %v607_v10 = vld [vmem:[%s3240_s3 + $0x8] sm:$0xff]  ;;  %v606_v11 = vld [vmem:[%s3240_s3] sm:$0xff]  ;;  %s3279_s2 = sld [smem:[#allocation18_spill]] }
  0x3b   : > { %s571_s24 = scalar_select %p570_p9, %s2934_s28, 1  ;;  %2446 = vmatprep.mubr.msk.f32.mxu0 %vm2809_vm1, %v2808_v8  ;;  %2439 = vmatpush3.msra.mxu0 %v609_v7  ;;  %v2287_v21 = vld [vmem:[%s3241_s4] ss:$0 sm:$0xff]  ;;  %vm697_vm2 = vcmask 64512   ;;  %v691_v53 = vld [vmem:[%s3242_s5 + $0x8] sm:$0xff]  ;;  %vm1784_vm3 = vcmask 523264  }
  0x3c   : > { %2440 = vmatprep.subr.mxu0 %v2808_v8  ;;  %2451 = vmatprep.mubr.msk.f32.mxu1 %vm2809_vm1, %v2808_v8  ;;  %s2810_s19 = smov 64   ;;  %s2813_s0 = smov 120   ;;  %v690_v57 = vld [vmem:[%s3242_s5] sm:$0xff]  ;;  %vm1786_vm4 = vcmask 785408  }
  0x3d   : > { %s2284_s26 = sshll.u32 %s571_s24, 3  ;;  %2441 = vmatpush3.msra.mxu0 %v608_v9  ;;  %s2811_s24 = smov 96  }
  0x3e   : > { %2442 = vmatprep.subr.mxu0 %v2808_v8  ;;  %s2814_s20 = smov 56   ;;  %s2817_s29 = smov 48  }
  0x3f   : > { %s573_s23 = scalar_lea.vmem %s3277_s21, %s2284_s26  ;;  %2443 = vmatpush3.msra.mxu0 %v607_v10  ;;  %s2812_s26 = smov 88  }
  0x40   : > { %v3007_v0 = vld [vmem:[%s573_s23] sm:$0xff]  ;;  %2444 = vmatprep.subr.mxu0 %v2808_v8  ;;  %s3278_s23 = sld [smem:[#allocation17_spill]]  ;;  %s2815_s21 = smov 80  }
  0x41   : > { %v576_v1 = vsel %vm575_vm0, %v3007_v0, 0.0  ;;  %2445 = vmatpush3.msra.mxu0 %v606_v11  ;;  %v2286_v18 = vld [vmem:[%s3279_s2] ss:$0 sm:$0xff]  ;;  %s2331_s18 = sshll.u32 %s2934_s28, 7  ;;  %s2822_s28 = smov [#allocation7]  }
  0x42   : > { %577 = vadd.xlane.f32.xlu0 %v576_v1  ;;  %2469 = vmatprep.subr.mxu0 %v2808_v8 }
  0x46   : > { %v2285_v16 = vld [vmem:[%s3278_s23] ss:$0 sm:$0xff]  ;;  %s2816_s23 = smov 112  }
  0xcb   : > { %v578_v2 = vpop.xlane.xlu0 %577 }
  0xcc   : > { %v580_v3 = vmul.f32 0.03125, %v578_v2 }
  0xce   : > { %v581_v4 = vsub.f32 %v3007_v0, %v580_v3 }
  0xd0   : > { %v582_v5 = vmul.f32 %v581_v4, %v581_v4 }
  0xd2   : > { %v583_v6 = vsel %vm575_vm0, %v582_v5, 0.0 }
  0xd3   : > { %584 = vadd.xlane.f32.xlu0 %v583_v6 }
 0x15c   : > { %v585_v12 = vpop.xlane.xlu0 %584 }
 0x15d   : > { %v586_v13 = vmul.f32 0.03125, %v585_v12 }
 0x15f   : > { %v587_v14 = vadd.f32 1e-06, %v586_v13 }
 0x161   : > { %2626 = vrsqrt.f32 %v587_v14 }
 0x16e   : > { %v2627_v15 = vpop.eup %2626 }
 0x16f   : > { %v589_v17 = vmul.f32 %v2627_v15, %v581_v4 }
 0x171   : > { %v597_v19 = vmul.f32 %v2285_v16, %v589_v17 }
 0x173   : > { %v605_v20 = vadd.f32 %v2286_v18, %v597_v19  ;;  %v692_v19 = vld [vmem:[%s3242_s5 + $0x10] sm:$0xff] }
 0x175   : > { %2447 = vmatmul.mubr.msk.f32.vlgmr.msra.gmra.mxu0 %vm575_vm0, %v605_v20 }
 0x176   : > { %2471 = vmatprep.mubr.msk.f32.mxu0 %vm2809_vm1, %v2808_v8  ;;  %2470 = vmatpush3.msra.mxu0 %v691_v53 }
 0x177   : > { %2479 = vmatprep.subr.mxu0 %v2808_v8 }
 0x235   : > { %v686_v22 = vpop.f32.mrf.mxu0 }
 0x236   : > { %v3047_v23 = vadd.f32 %v2287_v21, %v686_v22 }
 0x237   : > { %v2448_v24 = vpop.f32.mrf.mxu0 }
 0x238   : > { %784 = vrot.lane.b32.xlu0 %v3047_v23, %s2810_s19  ;;  %695 = vrot.lane.b32.xlu1 %v3047_v23, %s2811_s24 }
 0x2aa   : > { %v696_v25 = vpop.permute.xlu1 %695  ;;  %v785_v26 = vpop.permute.xlu0 %784 }
 0x2ab   : > { %2450 = vmatpush3.xpose.msk.msra.mxu1 %vm697_vm2, %v696_v25 }
 0x2ac   : > { %2454 = vmatprep.subr.mxu1 %v2808_v8 }
 0x2ae   : > { %2452 = vmatmul.mubr.msk.f32.vlgmr.msra.gmra.mxu1 %vm697_vm2, %v3047_v23 }
 0x2af   : > { %2455 = vmatpush3.msra.mxu1 %v785_v26  ;;  %2456 = vmatprep.mubr.msk.f32.mxu1 %vm2809_vm1, %v2808_v8 }
 0x2b0   : > { %2459 = vmatprep.subr.mxu1 %v2808_v8 }
 0x36e   : > { %v768_v27 = vpop.f32.mrf.mxu1 }
 0x36f   : > { %v772_v28 = vmul.f32 0.35355338, %v768_v27 }
 0x370   : > { %v2453_v29 = vpop.f32.mrf.mxu1 }
 0x371   : > { %v773_v30 = vsel %vm697_vm2, %v772_v28, -inf }
 0x372   : > { %774 = vmax.xlane.f32.xlu1 %v773_v30 }
 0x3fb   : > { %v775_v31 = vpop.xlane.xlu1 %774 }
 0x3fc   : > { %v776_v32 = vsub.f32 %v772_v28, %v775_v31 }
 0x3fe   : > { %v777_v33 = vmul.f32 1.442695, %v776_v32 }
 0x400   : > { %2628 = vpow2.f32 %v777_v33  ;;  %v693_v33 = vld [vmem:[%s3242_s5 + $0x18] sm:$0xff] }
 0x40d   : > { %v2629_v34 = vpop.eup %2628 }
 0x40e   : > { %v779_v35 = vsel %vm697_vm2, %v2629_v34, 0.0 }
 0x40f   : > { %780 = vadd.xlane.f32.xlu0 %v779_v35 }
 0x425   : > { %862 = vrot.lane.b32.xlu0 %v3047_v23, %s2812_s26  ;;  %s2821_s26 = smov 32  }
 0x429   : > { %860 = vrot.lane.b32.xlu0 %v3047_v23, %s2813_s0  ;;  %s2818_s0 = smov 72  }
 0x498   : > { %v781_v36 = vpop.xlane.xlu0 %780 }
 0x499   : > { %2630 = vrcp.f32 %v781_v36 }
 0x49c   : > { %v863_v38 = vpop.permute.xlu0 %862 }
 0x4a0   : > { %v861_v40 = vpop.permute.xlu0 %860 }
 0x4a6   : > { %v2631_v37 = vpop.eup %2630 }
 0x4a7   : > { %v783_v39 = vmul.f32 %v2631_v37, %v2629_v34 }
 0x4a9   : > { %2457 = vmatmul.mubr.msk.f32.vlgmr.msra.gmra.mxu1 %vm697_vm2, %v783_v39 }
 0x4aa   : > { %2460 = vmatpush3.xpose.msk.msra.mxu1 %vm697_vm2, %v863_v38  ;;  %2461 = vmatprep.mubr.msk.f32.mxu1 %vm2809_vm1, %v2808_v8 }
 0x4ab   : > { %2464 = vmatprep.subr.mxu1 %v2808_v8 }
 0x4ad   : > { %2462 = vmatmul.mubr.msk.f32.vlgmr.msra.gmra.mxu1 %vm697_vm2, %v861_v40 }
 0x4ae   : > { %2466 = vmatprep.mubr.msk.f32.mxu1 %vm2809_vm1, %v2808_v8 }
 0x569   : > { %v856_v41 = vpop.f32.mrf.mxu1 }
 0x56b   : > { %v2458_v42 = vpop.f32.mrf.mxu1 }
 0x56d   : > { %v934_v43 = vpop.f32.mrf.mxu1 }
 0x56e   : > { %v938_v44 = vmul.f32 0.35355338, %v934_v43  ;;  %v2305_v43 = vld [vmem:[%s3243_s6] ss:$0 sm:$0xff] }
 0x56f   : > { %v2463_v45 = vpop.f32.mrf.mxu1 }
 0x570   : > { %v939_v46 = vsel %vm697_vm2, %v938_v44, -inf }
 0x571   : > { %940 = vmax.xlane.f32.xlu1 %v939_v46 }
 0x582   : > { %950 = vrot.lane.b32.xlu1 %v3047_v23, %s2814_s20  ;;  %s2819_s20 = smov 104  }
 0x586   : > { %1174 = vrot.lane.b32.xlu1 %v3047_v23, %s2815_s21 }
 0x58a   : > { %1172 = vrot.lane.b32.xlu1 %v3047_v23, %s2816_s23 }
 0x5fa   : > { %v941_v47 = vpop.xlane.xlu1 %940 }
 0x5fb   : > { %v942_v48 = vsub.f32 %v938_v44, %v941_v47 }
 0x5fd   : > { %v943_v49 = vmul.f32 1.442695, %v942_v48 }
 0x5fe   : > { %v951_v50 = vpop.permute.xlu1 %950 }
 0x5ff   : > { %2632 = vpow2.f32 %v943_v49  ;;  %2465 = vmatpush3.msra.mxu1 %v951_v50 }
 0x600   : > { %2474 = vmatprep.subr.mxu1 %v2808_v8 }
 0x602   : > { %v1175_v59 = vpop.permute.xlu1 %1174 }
 0x606   : > { %v1173_v62 = vpop.permute.xlu1 %1172 }
 0x60c   : > { %v2633_v51 = vpop.eup %2632 }
 0x60d   : > { %v945_v52 = vsel %vm697_vm2, %v2633_v51, 0.0 }
 0x60e   : > { %946 = vadd.xlane.f32.xlu0 %v945_v52 }
 0x624   : > { %1262 = vrot.lane.b32.xlu0 %v3047_v23, %s2817_s29  ;;  %s2820_s29 = smov 40  }
 0x697   : > { %v947_v54 = vpop.xlane.xlu0 %946 }
 0x698   : > { %2634 = vrcp.f32 %v947_v54 }
 0x69b   : > { %v1263_v58 = vpop.permute.xlu0 %1262 }
 0x6a5   : > { %v2635_v55 = vpop.eup %2634 }
 0x6a6   : > { %v949_v56 = vmul.f32 %v2635_v55, %v2633_v51 }
 0x6a8   : > { %2467 = vmatmul.mubr.msk.f32.vlgmr.msra.gmra.mxu1 %vm697_vm2, %v949_v56 }
 0x6a9   : > { %2475 = vmatpush3.msra.mxu1 %v690_v57  ;;  %2476 = vmatprep.mubr.msk.f32.mxu1 %vm2809_vm1, %v2808_v8 }
 0x6aa   : > { %2484 = vmatprep.subr.mxu1 %v2808_v8 }
 0x6ac   : > { %2477 = vmatmul.mubr.msk.f32.vlgmr.msra.gmra.mxu1 %vm697_vm2, %v856_v41 }
 0x6ad   : > { %2485 = vmatpush3.msra.mxu1 %v1263_v58  ;;  %2486 = vmatprep.mubr.msk.f32.mxu1 %vm2809_vm1, %v2808_v8 }
 0x6ae   : > { %2494 = vmatprep.subr.mxu1 %v2808_v8 }
 0x768   : > { %v1022_v60 = vpop.f32.mrf.mxu1 }
 0x769   : > { %2472 = vmatmul.mubr.msk.f32.vlgmr.msra.gmra.mxu0 %vm697_vm2, %v1022_v60 }
 0x76a   : > { %2480 = vmatpush3.xpose.msk.msra.mxu0 %vm697_vm2, %v1175_v59  ;;  %v2468_v61 = vpop.f32.mrf.mxu1  ;;  %2481 = vmatprep.mubr.msk.f32.mxu0 %vm2809_vm1, %v2808_v8  ;;  %v2307_v59 = vld [vmem:[%s3245_s8] ss:$0 sm:$0xff] }
 0x76b   : > { %2489 = vmatprep.subr.mxu0 %v2808_v8 }
 0x76c   : > { %v1168_v63 = vpop.f32.mrf.mxu1 }
 0x76d   : > { %2482 = vmatmul.mubr.msk.f32.vlgmr.msra.gmra.mxu0 %vm697_vm2, %v1173_v62 }
 0x76e   : > { %v2478_v1 = vpop.f32.mrf.mxu1  ;;  %2491 = vmatprep.mubr.msk.f32.mxu0 %vm2809_vm1, %v2808_v8  ;;  %2490 = vmatpush3.msra.mxu0 %v692_v19  ;;  %v1800_v19 = vld [vmem:[#allocation2 + $0x48] sm:$0xff] }
 0x76f   : > { %2499 = vmatprep.subr.mxu0 %v2808_v8 }
 0x829   : > { %v1095_v2 = vpop.f32.mrf.mxu0 }
 0x82a   : > { %v1169_v34 = vadd.f32 %v1168_v63, %v1095_v2 }
 0x82b   : > { %v2473_v3 = vpop.f32.mrf.mxu0 }
 0x82d   : > { %v1246_v4 = vpop.f32.mrf.mxu0 }
 0x82e   : > { %v1250_v5 = vmul.f32 0.35355338, %v1246_v4 }
 0x82f   : > { %v2483_v6 = vpop.f32.mrf.mxu0 }
 0x830   : > { %v1251_v7 = vsel %vm697_vm2, %v1250_v5, -inf  ;;  %v1806_v6 = vld [vmem:[#allocation2 + $0x78] sm:$0xff] }
 0x831   : > { %1252 = vmax.xlane.f32.xlu1 %v1251_v7  ;;  %v1821_v7 = vld [vmem:[#allocation2 + $0xf0] sm:$0xff] }
 0x8ba   : > { %v1253_v9 = vpop.xlane.xlu1 %1252 }
 0x8bb   : > { %v1254_v10 = vsub.f32 %v1250_v5, %v1253_v9  ;;  %v1822_v5 = vld [vmem:[#allocation2 + $0xf8] sm:$0xff]  ;;  %v1805_v9 = vld [vmem:[#allocation2 + $0x70] sm:$0xff] }
 0x8bd   : > { %v1255_v11 = vmul.f32 1.442695, %v1254_v10  ;;  %v1820_v10 = vld [vmem:[#allocation2 + $0xe8] sm:$0xff] }
 0x8bf   : > { %2636 = vpow2.f32 %v1255_v11  ;;  %v1804_v11 = vld [vmem:[#allocation2 + $0x68] sm:$0xff] }
 0x8cc   : > { %v2637_v12 = vpop.eup %2636 }
 0x8cd   : > { %v1257_v13 = vsel %vm697_vm2, %v2637_v12, 0.0 }
 0x8ce   : > { %1258 = vadd.xlane.f32.xlu0 %v1257_v13  ;;  %v1803_v13 = vld [vmem:[#allocation2 + $0x60] sm:$0xff] }
 0x8e4   : > { %1414 = vrot.lane.b32.xlu0 %v3047_v23, %s2818_s0 }
 0x8e8   : > { %1412 = vrot.lane.b32.xlu0 %v3047_v23, %s2819_s20  ;;  %s567_s20 = sand.u32 1, %s2794_s25  }
 0x8e9   : > { %s2283_s21 = sshll.u32 %s567_s20, 3  ;;  %s2181_s0 = scalar_lea.sflag [#allocation4], %s567_s20 }
 0x957   : > { %v1259_v14 = vpop.xlane.xlu0 %1258 }
 0x958   : > { %2638 = vrcp.f32 %v1259_v14  ;;  %v1818_v14 = vld [vmem:[#allocation2 + $0xd8] sm:$0xff] }
 0x95b   : > { %v1415_v16 = vpop.permute.xlu0 %1414 }
 0x95f   : > { %v1413_v18 = vpop.permute.xlu0 %1412 }
 0x965   : > { %v2639_v15 = vpop.eup %2638 }
 0x966   : > { %v1261_v17 = vmul.f32 %v2639_v15, %v2637_v12  ;;  %v1819_v12 = vld [vmem:[#allocation2 + $0xe0] sm:$0xff]  ;;  %v1802_v15 = vld [vmem:[#allocation2 + $0x58] sm:$0xff] }
 0x968   : > { %2487 = vmatmul.mubr.msk.f32.vlgmr.msra.gmra.mxu1 %vm697_vm2, %v1261_v17  ;;  %v1801_v17 = vld [vmem:[#allocation2 + $0x50] sm:$0xff] }
 0x969   : > { %2495 = vmatpush3.xpose.msk.msra.mxu1 %vm697_vm2, %v1415_v16  ;;  %2496 = vmatprep.mubr.msk.f32.mxu1 %vm2809_vm1, %v2808_v8  ;;  %v1817_v16 = vld [vmem:[#allocation2 + $0xd0] sm:$0xff] }
 0x96a   : > { %2504 = vmatprep.subr.mxu1 %v2808_v8 }
 0x96c   : > { %2497 = vmatmul.mubr.msk.f32.vlgmr.msra.gmra.mxu1 %vm697_vm2, %v1413_v18  ;;  %v1816_v18 = vld [vmem:[#allocation2 + $0xc8] sm:$0xff] }
 0x96d   : > { %2506 = vmatprep.mubr.msk.f32.mxu1 %vm2809_vm1, %v2808_v8  ;;  %2505 = vmatpush3.msra.mxu1 %v693_v33 }
 0xa28   : > { %v1334_v20 = vpop.f32.mrf.mxu1 }
 0xa29   : > { %2492 = vmatmul.mubr.msk.f32.vlgmr.msra.gmra.mxu0 %vm697_vm2, %v1334_v20  ;;  %v1815_v20 = vld [vmem:[#allocation2 + $0xc0] sm:$0xff] }
 0xa2a   : > { %v2488_v21 = vpop.f32.mrf.mxu1  ;;  %2501 = vmatprep.mubr.msk.f32.mxu0 %vm2809_vm1, %v2808_v8 }
 0xa2b   : > { %v1799_v21 = vld [vmem:[#allocation2 + $0x40] sm:$0xff] }
 0xa2c   : > { %v1486_v22 = vpop.f32.mrf.mxu1 }
 0xa2d   : > { %v1490_v24 = vmul.f32 0.35355338, %v1486_v22  ;;  %v1814_v22 = vld [vmem:[#allocation2 + $0xb8] sm:$0xff] }
 0xa2e   : > { %v2498_v25 = vpop.f32.mrf.mxu1 }
 0xa2f   : > { %v1491_v26 = vsel %vm697_vm2, %v1490_v24, -inf  ;;  %v1813_v25 = vld [vmem:[#allocation2 + $0xb0] sm:$0xff] }
 0xa30   : > { %1492 = vmax.xlane.f32.xlu1 %v1491_v26  ;;  %v1797_v26 = vld [vmem:[#allocation2 + $0x30] sm:$0xff] }
 0xa41   : > { %1502 = vrot.lane.b32.xlu1 %v3047_v23, %s2820_s29 }
 0xab9   : > { %v1493_v27 = vpop.xlane.xlu1 %1492 }
 0xaba   : > { %v1494_v28 = vsub.f32 %v1490_v24, %v1493_v27  ;;  %v1798_v24 = vld [vmem:[#allocation2 + $0x38] sm:$0xff]  ;;  %v1812_v27 = vld [vmem:[#allocation2 + $0xa8] sm:$0xff] }
 0xabc   : > { %v1495_v29 = vmul.f32 1.442695, %v1494_v28  ;;  %v1796_v28 = vld [vmem:[#allocation2 + $0x28] sm:$0xff] }
 0xabd   : > { %v1503_v30 = vpop.permute.xlu1 %1502 }
 0xabe   : > { %2640 = vpow2.f32 %v1495_v29  ;;  %2500 = vmatpush3.msra.mxu0 %v1503_v30  ;;  %v1811_v29 = vld [vmem:[#allocation2 + $0xa0] sm:$0xff] }
 0xabf   : > { %2363 = vmatprep.subr.mxu0 %v1822_v5  ;;  %v1795_v30 = vld [vmem:[#allocation2 + $0x20] sm:$0xff] }
 0xacb   : > { %v2641_v31 = vpop.eup %2640 }
 0xacc   : > { %v1497_v32 = vsel %vm697_vm2, %v2641_v31, 0.0 }
 0xacd   : > { %1498 = vadd.xlane.f32.xlu0 %v1497_v32 }
 0xae9   : > { %v1407_v35 = vpop.f32.mrf.mxu0 }
 0xaea   : > { %v1411_v36 = vadd.f32 %v1407_v35, %v1169_v34  ;;  %v2308_v35 = vld [vmem:[%s3246_s9] ss:$0 sm:$0xff] }
 0xaeb   : > { %v2493_v37 = vpop.f32.mrf.mxu0 }
 0xaec   : > { %v2309_v37 = vld [vmem:[%s3247_s10] ss:$0 sm:$0xff] }
 0xb56   : > { %v1499_v23 = vpop.xlane.xlu0 %1498 }
 0xb57   : > { %2642 = vrcp.f32 %v1499_v23 }
 0xb64   : > { %v2643_v38 = vpop.eup %2642 }
 0xb65   : > { %v1501_v39 = vmul.f32 %v2643_v38, %v2641_v31 }
 0xb67   : > { %2502 = vmatmul.mubr.msk.f32.vlgmr.msra.gmra.mxu0 %vm697_vm2, %v1501_v39 }
 0xb68   : > { %2364 = vmatpush3.msra.mxu0 %v1806_v6  ;;  %v1791_v6 = vld [vmem:[#allocation2] sm:$0xff] }
 0xb69   : > { %2365 = vmatprep.subr.mxu0 %v1821_v7 }
 0xb6a   : > { %2366 = vmatpush3.msra.mxu0 %v1805_v9 }
 0xb6b   : > { %2367 = vmatprep.subr.mxu0 %v1820_v10 }
 0xb6c   : > { %2368 = vmatpush3.msra.mxu0 %v1804_v11 }
 0xb6d   : > { %2369 = vmatprep.subr.mxu0 %v1819_v12 }
 0xb6e   : > { %2370 = vmatpush3.msra.mxu0 %v1803_v13 }
 0xb6f   : > { %2371 = vmatprep.subr.mxu0 %v1818_v14 }
 0xb70   : > { %2372 = vmatpush3.msra.mxu0 %v1802_v15 }
 0xb71   : > { %2373 = vmatprep.subr.mxu0 %v1817_v16 }
 0xb72   : > { %2374 = vmatpush3.msra.mxu0 %v1801_v17 }
 0xb73   : > { %2375 = vmatprep.subr.mxu0 %v1816_v18 }
 0xb74   : > { %2376 = vmatpush3.msra.mxu0 %v1800_v19 }
 0xb75   : > { %2377 = vmatprep.subr.mxu0 %v1815_v20 }
 0xb76   : > { %2378 = vmatpush3.msra.mxu0 %v1799_v21 }
 0xb77   : > { %2379 = vmatprep.subr.mxu0 %v1814_v22 }
 0xb78   : > { %2380 = vmatpush3.msra.mxu0 %v1798_v24 }
 0xb79   : > { %2381 = vmatprep.subr.mxu0 %v1813_v25 }
 0xb7a   : > { %2382 = vmatpush3.msra.mxu0 %v1797_v26 }
 0xb7b   : > { %2383 = vmatprep.subr.mxu0 %v1812_v27 }
 0xb7c   : > { %2384 = vmatpush3.msra.mxu0 %v1796_v28 }
 0xb7d   : > { %2385 = vmatprep.subr.mxu0 %v1811_v29 }
 0xb7e   : > { %2386 = vmatpush3.msra.mxu0 %v1795_v30 }
 0xc27   : > { %v1574_v40 = vpop.f32.mrf.mxu0 }
 0xc28   : > { %2507 = vmatmul.mubr.msk.f32.vlgmr.msra.gmra.mxu1 %vm697_vm2, %v1574_v40 }
 0xc29   : > { %v2503_v41 = vpop.f32.mrf.mxu0 }
 0xce8   : > { %v1647_v42 = vpop.f32.mrf.mxu1 }
 0xce9   : > { %v1651_v44 = vadd.f32 %v1647_v42, %v1411_v36 }
 0xcea   : > { %v2508_v45 = vpop.f32.mrf.mxu1 }
 0xceb   : > { %v1659_v46 = vadd.f32 %v2305_v43, %v1651_v44 }
 0xced   : > { %v3133_v47 = vadd.f32 %v1659_v46, %v3007_v0  ;;  %v2306_v0 = vld [vmem:[%s3244_s7] ss:$0 sm:$0xff] }
 0xcef   : > { %v1661_v48 = vsel %vm575_vm0, %v3133_v47, 0.0 }
 0xcf0   : > { %1662 = vadd.xlane.f32.xlu1 %v1661_v48 }
 0xd79   : > { %v1663_v49 = vpop.xlane.xlu1 %1662 }
 0xd7a   : > { %v1664_v50 = vmul.f32 0.03125, %v1663_v49 }
 0xd7c   : > { %v1665_v51 = vsub.f32 %v3133_v47, %v1664_v50 }
 0xd7e   : > { %v1666_v52 = vmul.f32 %v1665_v51, %v1665_v51 }
 0xd80   : > { %v1667_v53 = vsel %vm575_vm0, %v1666_v52, 0.0  ;;  %v1810_v52 = vld [vmem:[#allocation2 + $0x98] sm:$0xff] }
 0xd81   : > { %1668 = vadd.xlane.f32.xlu0 %v1667_v53  ;;  %v1794_v53 = vld [vmem:[#allocation2 + $0x18] sm:$0xff]  ;;  %2387 = vmatprep.subr.mxu0 %v1810_v52 }
 0xd82   : > { %2388 = vmatpush3.msra.mxu0 %v1794_v53  ;;  %v2023_v53 = vld [vmem:[#allocation5 + $0xf8] sm:$0xff] }
 0xd83   : > { %2398 = vmatprep.subr.mxu1 %v2023_v53 }
 0xe0a   : > { %v1669_v54 = vpop.xlane.xlu0 %1668 }
 0xe0b   : > { %v1670_v55 = vmul.f32 0.03125, %v1669_v54  ;;  %v1809_v54 = vld [vmem:[#allocation2 + $0x90] sm:$0xff] }
 0xe0c   : > { %2389 = vmatprep.subr.mxu0 %v1809_v54  ;;  %v2007_v54 = vld [vmem:[#allocation5 + $0x78] sm:$0xff] }
 0xe0d   : > { %v1671_v56 = vadd.f32 1e-06, %v1670_v55  ;;  %2399 = vmatpush3.msra.mxu1 %v2007_v54  ;;  %v1992_v54 = vld [vmem:[#allocation5] sm:$0xff] }
 0xe0f   : > { %2644 = vrsqrt.f32 %v1671_v56  ;;  %v1793_v56 = vld [vmem:[#allocation2 + $0x10] sm:$0xff] }
 0xe10   : > { %2390 = vmatpush3.msra.mxu0 %v1793_v56  ;;  %v2006_v56 = vld [vmem:[#allocation5 + $0x70] sm:$0xff] }
 0xe1c   : > { %v2645_v57 = vpop.eup %2644 }
 0xe1d   : > { %v1673_v58 = vmul.f32 %v2645_v57, %v1665_v51 }
 0xe1f   : > { %v1681_v60 = vmul.f32 %v2306_v0, %v1673_v58  ;;  %v1808_v58 = vld [vmem:[#allocation2 + $0x88] sm:$0xff] }
 0xe20   : > { %2391 = vmatprep.subr.mxu0 %v1808_v58  ;;  %v2020_v58 = vld [vmem:[#allocation5 + $0xe0] sm:$0xff] }
 0xe21   : > { %v1689_v61 = vadd.f32 %v2307_v59, %v1681_v60 }
 0xe23   : > { %v1690_v62 = vsel %vm575_vm0, %v1689_v61, 0.0 }
 0xe24   : > { %1691 = vadd.xlane.f32.xlu0 %v1690_v62 }
 0xead   : > { %v1692_v63 = vpop.xlane.xlu0 %1691 }
 0xeae   : > { %v1693_v1 = vmul.f32 0.03125, %v1692_v63 }
 0xeb0   : > { %v1694_v2 = vsub.f32 %v1689_v61, %v1693_v1  ;;  %v1792_v61 = vld [vmem:[#allocation2 + $0x8] sm:$0xff] }
 0xeb1   : > { %2392 = vmatpush3.msra.mxu0 %v1792_v61  ;;  %v2003_v61 = vld [vmem:[#allocation5 + $0x58] sm:$0xff] }
 0xeb2   : > { %v1695_v3 = vmul.f32 %v1694_v2, %v1694_v2 }
 0xeb4   : > { %v1696_v4 = vsel %vm575_vm0, %v1695_v3, 0.0 }
 0xeb5   : > { %1697 = vadd.xlane.f32.xlu0 %v1696_v4 }
 0xf3e   : > { %v1698_v31 = vpop.xlane.xlu0 %1697 }
 0xf3f   : > { %v1699_v32 = vmul.f32 0.03125, %v1698_v31 }
 0xf41   : > { %v1700_v33 = vadd.f32 1e-05, %v1699_v32 }
 0xf43   : > { %2646 = vrsqrt.f32 %v1700_v33 }
 0xf50   : > { %v2647_v34 = vpop.eup %2646 }
 0xf51   : > { %v1702_v36 = vmul.f32 %v2647_v34, %v1694_v2  ;;  %v1807_v2 = vld [vmem:[#allocation2 + $0x80] sm:$0xff] }
 0xf52   : > { %2393 = vmatprep.subr.mxu0 %v1807_v2  ;;  %v2001_v2 = vld [vmem:[#allocation5 + $0x48] sm:$0xff] }
 0xf53   : > { %v1710_v23 = vmul.f32 %v2308_v35, %v1702_v36  ;;  %2394 = vmatpush3.msra.mxu0 %v1791_v6  ;;  %v1999_v6 = vld [vmem:[#allocation5 + $0x38] sm:$0xff] }
 0xf54   : > { %2509 = vmatprep.subr.mxu0 %v2808_v8 }
 0xf55   : > { %v1718_v38 = vadd.f32 %v2309_v37, %v1710_v23 }
 0xf57   : > { %v2312_v39 = vadd.f32 0.85714287, %v1718_v38  ;;  %v2316_v40 = vadd.f32 -1.4285717, %v1718_v38  ;;  %v2311_v41 = vadd.f32 1.4285715, %v1718_v38 }
 0xf58   : > { %v2315_v42 = vadd.f32 -0.8571429, %v1718_v38  ;;  %v2313_v43 = vadd.f32 0.28571418, %v1718_v38  ;;  %v2317_v44 = vadd.f32 -2.0, %v1718_v38  ;;  %v2310_v18 = vadd.f32 2.0, %v1718_v38 }
 0xf59   : > { %v1730_v45 = vmul.f32 0.5, %v2312_v39  ;;  %v1750_v46 = vmul.f32 0.5, %v2316_v40  ;;  %v1725_v48 = vmul.f32 0.5, %v2311_v41  ;;  %v2314_v19 = vadd.f32 -0.2857144, %v1718_v38 }
 0xf5a   : > { %v1745_v49 = vmul.f32 0.5, %v2315_v42  ;;  %v1735_v50 = vmul.f32 0.5, %v2313_v43  ;;  %v1755_v51 = vmul.f32 0.5, %v2317_v44  ;;  %v1720_v20 = vmul.f32 0.5, %v2310_v18  ;;  %v2318_v18 = vld [vmem:[%s3249_s12] ss:$0 sm:$0xff] }
 0xf5b   : > { %2648 = vtanh.f32 %v1730_v45  ;;  %v1740_v21 = vmul.f32 0.5, %v2314_v19 }
 0xf5c   : > { %2650 = vtanh.f32 %v1750_v46 }
 0xf5d   : > { %2652 = vtanh.f32 %v1725_v48 }
 0xf5e   : > { %2654 = vtanh.f32 %v1745_v49 }
 0xf5f   : > { %2656 = vtanh.f32 %v1735_v50 }
 0xf60   : > { %2658 = vtanh.f32 %v1755_v51 }
 0xf61   : > { %2660 = vtanh.f32 %v1720_v20  ;;  %v2319_v20 = vld [vmem:[%s3250_s13] ss:$0 sm:$0xff] }
 0xf62   : > { %2662 = vtanh.f32 %v1740_v21 }
 0xf68   : > { %v2649_v55 = vpop.eup %2648 }
 0xf69   : > { %v2651_v57 = vpop.eup %2650  ;;  %v1732_v0 = vmul.f32 %v2649_v55, %v2649_v55  ;;  %v2022_v55 = vld [vmem:[#allocation5 + $0xf0] sm:$0xff] }
 0xf6a   : > { %v2653_v59 = vpop.eup %2652  ;;  %v1752_v60 = vmul.f32 %v2651_v57, %v2651_v57  ;;  %v2021_v57 = vld [vmem:[#allocation5 + $0xe8] sm:$0xff]  ;;  %2400 = vmatprep.subr.mxu1 %v2022_v55 }
 0xf6b   : > { %v2655_v62 = vpop.eup %2654  ;;  %v1733_v63 = vsub.f32 1.0, %v1732_v0  ;;  %v1727_v1 = vmul.f32 %v2653_v59, %v2653_v59  ;;  %v2005_v0 = vld [vmem:[#allocation5 + $0x68] sm:$0xff]  ;;  %2401 = vmatpush3.msra.mxu1 %v2006_v56  ;;  %v2004_v59 = vld [vmem:[#allocation5 + $0x60] sm:$0xff] }
 0xf6c   : > { %v2657_v3 = vpop.eup %2656  ;;  %v1753_v4 = vsub.f32 1.0, %v1752_v60  ;;  %v1747_v5 = vmul.f32 %v2655_v62, %v2655_v62  ;;  %2402 = vmatprep.subr.mxu1 %v2021_v57  ;;  %v2019_v60 = vld [vmem:[#allocation5 + $0xd8] sm:$0xff]  ;;  %v2018_v62 = vld [vmem:[#allocation5 + $0xd0] sm:$0xff] }
 0xf6d   : > { %v2659_v7 = vpop.eup %2658  ;;  %v1728_v9 = vsub.f32 1.0, %v1727_v1  ;;  %v1737_v10 = vmul.f32 %v2657_v3, %v2657_v3  ;;  %2403 = vmatpush3.msra.mxu1 %v2005_v0  ;;  %v2017_v1 = vld [vmem:[#allocation5 + $0xc8] sm:$0xff]  ;;  %v2016_v3 = vld [vmem:[#allocation5 + $0xc0] sm:$0xff]  ;;  %v2097_v0 = vld [vmem:[%s3252_s15 + $0x18] sm:$0xff] }
 0xf6e   : > { %v2601_v11 = vpack.i.bf16 %v1733_v63, %v1753_v4  ;;  %v1748_v12 = vsub.f32 1.0, %v1747_v5  ;;  %v1757_v13 = vmul.f32 %v2659_v7, %v2659_v7  ;;  %v2661_v22 = vpop.eup %2660  ;;  %2404 = vmatprep.subr.mxu1 %v2020_v58  ;;  %v2002_v63 = vld [vmem:[#allocation5 + $0x50] sm:$0xff]  ;;  %v2000_v4 = vld [vmem:[#allocation5 + $0x40] sm:$0xff]  ;;  %v2015_v5 = vld [vmem:[#allocation5 + $0xb8] sm:$0xff] }
 0xf6f   : > { %v1738_v15 = vsub.f32 1.0, %v1737_v10  ;;  %v2663_v24 = vpop.eup %2662  ;;  %v1722_v25 = vmul.f32 %v2661_v22, %v2661_v22  ;;  %2405 = vmatpush3.msra.mxu1 %v2004_v59  ;;  %v2014_v7 = vld [vmem:[#allocation5 + $0xb0] sm:$0xff]  ;;  %v2013_v10 = vld [vmem:[#allocation5 + $0xa8] sm:$0xff] }
 0xf70   : > { %2602 = vrot.lane.b32.xlu1 %v2601_v11, %s2810_s19  ;;  %v2596_v14 = vpack.i.bf16 %v1728_v9, %v1748_v12  ;;  %v1758_v16 = vsub.f32 1.0, %v1757_v13  ;;  %v1742_v26 = vmul.f32 %v2663_v24, %v2663_v24  ;;  %2406 = vmatprep.subr.mxu1 %v2019_v60  ;;  %v1998_v9 = vld [vmem:[#allocation5 + $0x30] sm:$0xff]  ;;  %v1997_v11 = vld [vmem:[#allocation5 + $0x28] sm:$0xff]  ;;  %v2012_v12 = vld [vmem:[#allocation5 + $0xa0] sm:$0xff] }
 0xf71   : > { %v1723_v31 = vsub.f32 1.0, %v1722_v25  ;;  %2407 = vmatpush3.msra.mxu1 %v2003_v61  ;;  %v1996_v13 = vld [vmem:[#allocation5 + $0x20] sm:$0xff] }
 0xf72   : > { %2597 = vrot.lane.b32.xlu0 %v2596_v14, %s2821_s26  ;;  %v2606_v17 = vpack.i.bf16 %v1738_v15, %v1758_v16  ;;  %v1743_v32 = vsub.f32 1.0, %v1742_v26  ;;  %2408 = vmatprep.subr.mxu1 %v2018_v62 }
 0xf73   : > { %2409 = vmatpush3.msra.mxu1 %v2002_v63 }
 0xf74   : > { %2410 = vmatprep.subr.mxu1 %v2017_v1 }
 0xf75   : > { %2411 = vmatpush3.msra.mxu1 %v2001_v2 }
 0xf76   : > { %2607 = vrot.lane.b32.xlu0 %v2606_v17, %s2811_s24  ;;  %2412 = vmatprep.subr.mxu1 %v2016_v3 }
 0xf77   : > { %2413 = vmatpush3.msra.mxu1 %v2000_v4 }
 0xf78   : > { %2414 = vmatprep.subr.mxu1 %v2015_v5 }
 0xf79   : > { %2415 = vmatpush3.msra.mxu1 %v1999_v6 }
 0xf7a   : > { %2416 = vmatprep.subr.mxu1 %v2014_v7 }
 0xf7b   : > { %2417 = vmatpush3.msra.mxu1 %v1998_v9 }
 0xf7c   : > { %2418 = vmatprep.subr.mxu1 %v2013_v10 }
 0xf7d   : > { %2419 = vmatpush3.msra.mxu1 %v1997_v11 }
 0xf7e   : > { %2420 = vmatprep.subr.mxu1 %v2012_v12 }
 0xf7f   : > { %2421 = vmatpush3.msra.mxu1 %v1996_v13 }
 0xfe2   : > { %v2603_v27 = vpop.permute.xlu1 %2602 }
 0xfe3   : > { %v2605_v33 = vunpack.i.h.bf16 %v2603_v27  ;;  %v2604_v34 = vunpack.i.l.bf16 %v2603_v27 }
 0xfe4   : > { %v2598_v28 = vpop.permute.xlu0 %2597 }
 0xfe5   : > { %v2600_v29 = vunpack.i.h.bf16 %v2598_v28  ;;  %v2599_v30 = vunpack.i.l.bf16 %v2598_v28 }
 0xfe7   : > { %v1783_v35 = vsel %vm575_vm0, %v1723_v31, %v2600_v29  ;;  %v1788_v36 = vsel %vm575_vm0, %v1743_v32, %v2599_v30 }
 0xfe8   : > { %v2608_v37 = vpop.permute.xlu0 %2607  ;;  %v1789_v39 = vsel %vm1784_vm3, %v1788_v36, %v2604_v34  ;;  %v1785_v40 = vsel %vm1784_vm3, %v1783_v35, %v2605_v33  ;;  %v2011_v36 = vld [vmem:[#allocation5 + $0x98] sm:$0xff] }
 0xfe9   : > { %v2610_v23 = vunpack.i.h.bf16 %v2608_v37  ;;  %v2609_v38 = vunpack.i.l.bf16 %v2608_v37  ;;  %v1995_v37 = vld [vmem:[#allocation5 + $0x18] sm:$0xff]  ;;  %2422 = vmatprep.subr.mxu1 %v2011_v36 }
 0xfea   : > { %2423 = vmatpush3.msra.mxu1 %v1995_v37 }
 0xfeb   : > { %v1790_v41 = vsel %vm1786_vm4, %v1789_v39, %v2609_v38  ;;  %v1787_v42 = vsel %vm1786_vm4, %v1785_v40, %v2610_v23  ;;  %v2010_v23 = vld [vmem:[#allocation5 + $0x90] sm:$0xff] }
 0xfec   : > { %1887 = vmatprep.mubr.f32.mxu0 %v1790_v41  ;;  %v1994_v39 = vld [vmem:[#allocation5 + $0x10] sm:$0xff]  ;;  %2424 = vmatprep.subr.mxu1 %v2010_v23 }
 0xfed   : > { %1888 = vmatmul.mubr.f32.vlgmr.msra.gmra.mxu0 %v1787_v42  ;;  %v2009_v42 = vld [vmem:[#allocation5 + $0x88] sm:$0xff]  ;;  %2425 = vmatpush3.msra.mxu1 %v1994_v39 }
 0xfee   : > { %2517 = vmatprep.mubr.msk.f32.mxu0 %vm2809_vm1, %v2808_v8  ;;  %2426 = vmatprep.subr.mxu1 %v2009_v42 }
 0xfef   : > { %2510 = vmatpush3.msra.mxu0 %v2097_v0 }
 0xff0   : > { %2511 = vmatprep.subr.mxu0 %v2808_v8 }
0x10ad   : > { %v2395_v43 = vpop.f32.mrf.mxu0 }
0x10af   : > { %v2396_v44 = vpop.f32.mrf.mxu0 }
0x10b0   : > { %v2397_v45 = vadd.f32 %v2396_v44, %v2395_v43 }
0x10b2   : > { %v1893_v46 = vsel %vm575_vm0, %v2397_v45, 0.0 }
0x10b3   : > { %1894 = vadd.xlane.f32.xlu0 %v1893_v46 }
0x113c   : > { %v1895_v48 = vpop.xlane.xlu0 %1894 }
0x113d   : > { %v1896_v49 = vmul.f32 0.03125, %v1895_v48 }
0x113f   : > { %v1897_v50 = vsub.f32 %v2397_v45, %v1896_v49  ;;  %v1993_v45 = vld [vmem:[#allocation5 + $0x8] sm:$0xff] }
0x1140   : > { %2427 = vmatpush3.msra.mxu1 %v1993_v45 }
0x1141   : > { %v1898_v51 = vmul.f32 %v1897_v50, %v1897_v50 }
0x1143   : > { %v1899_v52 = vsel %vm575_vm0, %v1898_v51, 0.0 }
0x1144   : > { %1900 = vadd.xlane.f32.xlu1 %v1899_v52 }
0x11cd   : > { %v1901_v14 = vpop.xlane.xlu1 %1900 }
0x11ce   : > { %v1902_v15 = vmul.f32 0.03125, %v1901_v14 }
0x11d0   : > { %v1903_v16 = vadd.f32 1e-05, %v1902_v15 }
0x11d2   : > { %2664 = vrsqrt.f32 %v1903_v16 }
0x11df   : > { %v2665_v17 = vpop.eup %2664 }
0x11e0   : > { %v1905_v19 = vmul.f32 %v2665_v17, %v1897_v50  ;;  %v2008_v50 = vld [vmem:[#allocation5 + $0x80] sm:$0xff] }
0x11e1   : > { %2428 = vmatprep.subr.mxu1 %v2008_v50 }
0x11e2   : > { %v1913_v21 = vmul.f32 %v2318_v18, %v1905_v19  ;;  %2429 = vmatpush3.msra.mxu1 %v1992_v54 }
0x11e4   : > { %v1921_v22 = vadd.f32 %v2319_v20, %v1913_v21 }
0x11e6   : > { %v2322_v24 = vadd.f32 0.85714287, %v1921_v22  ;;  %v2326_v25 = vadd.f32 -1.4285717, %v1921_v22  ;;  %v2321_v26 = vadd.f32 1.4285715, %v1921_v22 }
0x11e7   : > { %v2325_v27 = vadd.f32 -0.8571429, %v1921_v22  ;;  %v2323_v28 = vadd.f32 0.28571418, %v1921_v22  ;;  %v2327_v29 = vadd.f32 -2.0, %v1921_v22  ;;  %v2320_v2 = vadd.f32 2.0, %v1921_v22 }
0x11e8   : > { %v1933_v30 = vmul.f32 0.5, %v2322_v24  ;;  %v1953_v31 = vmul.f32 0.5, %v2326_v25  ;;  %v1928_v32 = vmul.f32 0.5, %v2321_v26  ;;  %v2324_v3 = vadd.f32 -0.2857144, %v1921_v22 }
0x11e9   : > { %v1948_v33 = vmul.f32 0.5, %v2325_v27  ;;  %v1938_v34 = vmul.f32 0.5, %v2323_v28  ;;  %v1958_v35 = vmul.f32 0.5, %v2327_v29  ;;  %v1923_v4 = vmul.f32 0.5, %v2320_v2  ;;  %v2096_v29 = vld [vmem:[%s3252_s15 + $0x10] sm:$0xff] }
0x11ea   : > { %2666 = vtanh.f32 %v1933_v30  ;;  %v1943_v5 = vmul.f32 0.5, %v2324_v3  ;;  %2512 = vmatpush3.msra.mxu0 %v2096_v29  ;;  %v2095_v30 = vld [vmem:[%s3252_s15 + $0x8] sm:$0xff] }
0x11eb   : > { %2668 = vtanh.f32 %v1953_v31  ;;  %2513 = vmatprep.subr.mxu0 %v2808_v8  ;;  %v2094_v31 = vld [vmem:[%s3252_s15] sm:$0xff] }
0x11ec   : > { %2670 = vtanh.f32 %v1928_v32  ;;  %2514 = vmatpush3.msra.mxu0 %v2095_v30 }
0x11ed   : > { %2672 = vtanh.f32 %v1948_v33  ;;  %2515 = vmatprep.subr.mxu0 %v2808_v8 }
0x11ee   : > { %2674 = vtanh.f32 %v1938_v34  ;;  %2516 = vmatpush3.msra.mxu0 %v2094_v31 }
0x11ef   : > { %2676 = vtanh.f32 %v1958_v35  ;;  %v2328_v35 = vld [vmem:[%s3253_s16] ss:$0 sm:$0xff] }
0x11f0   : > { %2678 = vtanh.f32 %v1923_v4 }
0x11f1   : > { %2680 = vtanh.f32 %v1943_v5 }
0x11f7   : > { %v2667_v38 = vpop.eup %2666 }
0x11f8   : > { %v2669_v40 = vpop.eup %2668  ;;  %v1935_v41 = vmul.f32 %v2667_v38, %v2667_v38 }
0x11f9   : > { %v2671_v43 = vpop.eup %2670  ;;  %v1955_v44 = vmul.f32 %v2669_v40, %v2669_v40 }
0x11fa   : > { %v2673_v46 = vpop.eup %2672  ;;  %v1936_v48 = vsub.f32 1.0, %v1935_v41  ;;  %v1930_v49 = vmul.f32 %v2671_v43, %v2671_v43 }
0x11fb   : > { %v2675_v51 = vpop.eup %2674  ;;  %v1956_v52 = vsub.f32 1.0, %v1955_v44  ;;  %v1950_v53 = vmul.f32 %v2673_v46, %v2673_v46 }
0x11fc   : > { %v2677_v55 = vpop.eup %2676  ;;  %v1931_v56 = vsub.f32 1.0, %v1930_v49  ;;  %v1940_v57 = vmul.f32 %v2675_v51, %v2675_v51 }
0x11fd   : > { %v2616_v58 = vpack.i.bf16 %v1936_v48, %v1956_v52  ;;  %v1951_v59 = vsub.f32 1.0, %v1950_v53  ;;  %v1960_v60 = vmul.f32 %v2677_v55, %v2677_v55  ;;  %v2679_v6 = vpop.eup %2678 }
0x11fe   : > { %v1941_v62 = vsub.f32 1.0, %v1940_v57  ;;  %v2681_v7 = vpop.eup %2680  ;;  %v1925_v9 = vmul.f32 %v2679_v6, %v2679_v6 }
0x11ff   : > { %2617 = vrot.lane.b32.xlu1 %v2616_v58, %s2810_s19  ;;  %v2611_v61 = vpack.i.bf16 %v1931_v56, %v1951_v59  ;;  %v1961_v63 = vsub.f32 1.0, %v1960_v60  ;;  %v1945_v10 = vmul.f32 %v2681_v7, %v2681_v7  ;;  %s569_s19 = scalar_lea.vmem [#allocation7], %s2283_s21  ;;  %s2738_s21 = sshll.u32 %s2822_s28, 4  ;;  %s2739_s21 = int_to_ptr.vmem [resolvable:$false] %s2738_s21 }
0x1200   : > { %v1926_v15 = vsub.f32 1.0, %v1925_v9  ;;  %s2740_s23 = scalar_lea.vmem %s2739_s21, 256 }
0x1201   : > { %2612 = vrot.lane.b32.xlu0 %v2611_v61, %s2821_s26  ;;  %v2621_v1 = vpack.i.bf16 %v1941_v62, %v1961_v63  ;;  %v1946_v16 = vsub.f32 1.0, %v1945_v10  ;;  %s2192_s26 = scalar_lea.hbm %s3254_s17, %s2331_s18 }
0x1205   : > { %2622 = vrot.lane.b32.xlu0 %v2621_v1, %s2811_s24  ;;  %s2194_s24 = sshll.u32 %s569_s19, 4  ;;  %s2195_s24 = int_to_ptr.vmem [resolvable:$true] %s2194_s24 }
0x1206   : > { %s2734_s2 = scalar_lea.vmem %s2195_s24, 128  ;;  %p2741_p11 = scmp.lt.s32.totalorder %s2195_s24, %s2739_s21 }
0x1207   : > { %p2735_p10 = scmp.ne.s32.totalorder %s2195_s24, %s2734_s2  ;;  %p2742_p0 = scmp.lt.s32.totalorder %s2740_s23, %s2734_s2 }
0x1209   : > { %p2736_p12 = pnand %p2735_p10, %p2951_p5  ;;  %p2743_p1 = por %p2742_p0, %p2741_p11 }
0x120b   : > { %p2737_p8 = pneg %p2736_p12 }
0x120d   : > { %p2744_p3 = pnand %p2743_p1, %p2737_p8 }
0x1271   : > { %v2618_v11 = vpop.permute.xlu1 %2617 }
0x1272   : > { %v2620_v17 = vunpack.i.h.bf16 %v2618_v11  ;;  %v2619_v18 = vunpack.i.l.bf16 %v2618_v11 }
0x1273   : > { %v2613_v12 = vpop.permute.xlu0 %2612 }
0x1274   : > { %v2615_v13 = vunpack.i.h.bf16 %v2613_v12  ;;  %v2614_v14 = vunpack.i.l.bf16 %v2613_v12 }
0x1276   : > { %v1986_v19 = vsel %vm575_vm0, %v1926_v15, %v2615_v13  ;;  %v1989_v20 = vsel %vm575_vm0, %v1946_v16, %v2614_v14 }
0x1277   : > { %v2623_v21 = vpop.permute.xlu0 %2622  ;;  %v1990_v25 = vsel %vm1784_vm3, %v1989_v20, %v2619_v18  ;;  %v1987_v26 = vsel %vm1784_vm3, %v1986_v19, %v2620_v17 }
0x1278   : > { %v2625_v22 = vunpack.i.h.bf16 %v2623_v21  ;;  %v2624_v24 = vunpack.i.l.bf16 %v2623_v21 }
0x127a   : > { %v1991_v27 = vsel %vm1786_vm4, %v1990_v25, %v2624_v24  ;;  %v1988_v28 = vsel %vm1786_vm4, %v1987_v26, %v2625_v22 }
0x127b   : > { %2088 = vmatprep.mubr.f32.mxu1 %v1991_v27 }
0x127c   : > { %2089 = vmatmul.mubr.f32.vlgmr.msra.gmra.mxu1 %v1988_v28 }
0x133c   : > { %v2430_v32 = vpop.f32.mrf.mxu1 }
0x133e   : > { %v2431_v33 = vpop.f32.mrf.mxu1 }
0x133f   : > { %v2432_v34 = vadd.f32 %v2431_v33, %v2430_v32 }
0x1341   : > { %2518 = vmatmul.mubr.msk.f32.vlgmr.msra.gmra.mxu0 %vm575_vm0, %v2432_v34 }
0x1401   : > { %v2174_v36 = vpop.f32.mrf.mxu0 }
0x1402   : > { %v2175_v37 = vadd.f32 %v2328_v35, %v2174_v36 }
0x1403   : > { %v2519_v23 = vpop.f32.mrf.mxu0 }
0x1404   : > { %v2178_v8 = vadd.f32 %v2175_v37, %v3133_v47 }
0x1406   : > { %2179 = vst.msk [vmem:[%s569_s19] sm:$0xff] %vm575_vm0, %v2178_v8 }
0x1407   : > { %2747 = shalt.err (!%p2744_p3)
}
0x1408   : > { %s2748_s29 = scalar_lea.hbm %s2192_s26, 128  ;;  %s2752_s19 = scalar_lea.hbm %s3254_s17, 256 }
0x1409   : > { %p2749_p2 = scmp.ne.s32.totalorder %s2192_s26, %s2748_s29  ;;  %p2753_p7 = scmp.lt.s32.totalorder %s2192_s26, %s3254_s17 }
0x140a   : > { %p2754_p6 = scmp.lt.s32.totalorder %s2752_s19, %s2748_s29 }
0x140b   : > { %p2750_p4 = pnand %p2749_p2, %p2951_p5 }
0x140c   : > { %p2755_p9 = por %p2754_p6, %p2753_p7 }
0x140d   : > { %p2751_p13 = pneg %p2750_p4 }
0x140f   : > { %p2756_p10 = pnand %p2755_p9, %p2751_p13 }
0x1411   : > { %2759 = shalt.err (!%p2756_p10)
}
0x1412   : > { %2528 = dma.vmem_to_hbm [thread:$0]  (%p2951_p5), %s2195_s24, 128, %s2192_s26, %s2181_s0  }
0x1413 PF: > { %s3280_s2 = sld [smem:[#allocation11_spill]]  ;;  %p2545_p12 = scmp.ge.s32.totalorder %s2802_s27, 2 }
0x1414   : > { %s3281_s28 = sld [smem:[#allocation15_spill]] }
0x1419   : > { %s2206_s21 = sand.u32 1, %s3280_s2  }
0x141a   : > { %p3282_p8 = scmp.ne.s32.totalorder %s3281_s28, 0  ;;  %s2207_s23 = scalar_lea.sflag [#allocation4], %s2206_s21 }
0x141c   : > { %p2538_p11 = pnand %p2545_p12, %p3282_p8 }
0x141e   : > { %p2539_p0 = pneg %p2538_p11 }
0x1420   : > { %2785 = dma.done.wait (%p2539_p0), %s2207_s23, 128  }
0x1421   : > { %2787 = vsyncadd (%p2539_p0), %s2207_s23, 4294967168  ;;  %s3283_s27 = sld [smem:[#allocation13_spill]]  ;;  %s3286_s24 = smov %s2794_s25 }
0x1422   : > { %s3284_s29 = sld [smem:[#allocation12_spill]] }
0x1423   : > { %s3285_s26 = sld [smem:[#allocation14_spill]] }
0x1427   : > { %p29_p1 = scmp.ge.s32.totalorder %s3283_s27, 4  }
0x1428   : > { %s3287_s25 = smov %s3284_s29 }
0x1429   :  { %31 = sbr.rel (!%p29_p1) target bundleno = 9 (0x9), region = 132 }
0x142e   :  { %2212 = vsyncpa [#allocation3], 1 }
0x142f   :  { %2214 = vsyncpa [#allocation3 + $0x1], 1 }
0x1430   :  { %2215 = vsyncpa [#allocation6], 1 }
0x1431   :  { %2216 = vsyncpa [#allocation4], 1 }
0x1432   :  { %2218 = vsyncpa [#allocation4 + $0x1], 1 }

</bundles_post_ra>
